<compile_context>
chip_gen: v6e
topology: v6e:2x2x1
jax: 0.10.0
libtpu: 0.0.40
codegen_flags: <defaults>
</compile_context>

<pallas_src>
import functools

import jax
import jax.numpy as jnp
from jax.experimental import pallas as pl
from jax.experimental.pallas import tpu as pltpu

NEG_SLOPE = 0.01  # nn.LeakyReLU default negative_slope
LANE = 128        # TPU lane width


def _leaky_relu(x):
    return jnp.where(x >= 0, x, NEG_SLOPE * x)


def _round_up(n, m):
    return ((n + m - 1) // m) * m


def _pad2d(a, rows, cols):
    r, c = a.shape
    if r == rows and c == cols:
        return a
    return jnp.pad(a, ((0, rows - r), (0, cols - c)))


def _mlp_kernel(*refs, num_layers, final_activation):
    # refs = (x_ref, w0_ref, b0_ref, w1_ref, b1_ref, ..., o_ref)
    x_ref = refs[0]
    o_ref = refs[-1]
    params = refs[1:-1]

    h = x_ref[...]  # compute dtype (f32 or bf16)
    for layer in range(num_layers):
        w = params[2 * layer][...]        # (d_in_p, d_out_p), compute dtype
        b = params[2 * layer + 1][...]    # (1, d_out_p), f32
        z = jnp.dot(h, w, preferred_element_type=jnp.float32) + b  # f32 accumulate
        is_last = layer == num_layers - 1
        if (not is_last) or final_activation:
            z = _leaky_relu(z)
        # Keep the MXU inputs in the compute dtype between layers; final stays f32.
        h = z if is_last else z.astype(w.dtype)
    o_ref[...] = h.astype(o_ref.dtype)


def mlp_forward(x, weights, biases, *, final_activation=False, bm=None,
                compute_dtype=jnp.float32):
    """Fused MLP forward.

    x:        (B, dims[0]) array, or tuple/list concatenated on the last axis
    weights:  list of (dims[i], dims[i+1]) matrices (transposed vs. PyTorch Linear)
    biases:   list of (dims[i+1],) vectors
    """
    if isinstance(x, (tuple, list)):
        x = jnp.concatenate(x, axis=-1)

    num_layers = len(weights)
    assert num_layers >= 2, "must have at least 3 dims (input, *hiddens, output)"
    B, d_in = x.shape
    assert weights[0].shape[0] == d_in
    d_out = weights[-1].shape[1]
    out_dtype = x.dtype

    # Lane-pad every feature dim to a multiple of 128. Zero padding is exact.
    dims = [d_in] + [w.shape[1] for w in weights]
    dims_p = [_round_up(d, LANE) for d in dims]

    # MXU-aligned batch tile (>=128 rows); callers may override (e.g. 256 on v6e/v7x).
    if bm is None:
        bm = min(256, _round_up(B, 128))
    assert bm % 8 == 0, "batch tile must be sublane aligned"
    B_p = _round_up(B, bm)

    x_p = _pad2d(x, B_p, dims_p[0]).astype(compute_dtype)
    w_p = [_pad2d(w, dims_p[i], dims_p[i + 1]).astype(compute_dtype)
           for i, w in enumerate(weights)]
    b_p = [_pad2d(b.reshape(1, -1).astype(jnp.float32), 1, dims_p[i + 1])
           for i, b in enumerate(biases)]

    grid = (B_p // bm,)

    # Advisory cost estimate + explicit VMEM budget (v7x has only 64 MiB physical VMEM).
    csize = jnp.dtype(compute_dtype).itemsize
    osize = jnp.dtype(out_dtype).itemsize
    flops = 2 * B_p * sum(a * b for a, b in zip(dims_p[:-1], dims_p[1:]))
    param_bytes = sum(int(w.size) * csize for w in w_p) + sum(int(b.size) * 4 for b in b_p)
    io_bytes = B_p * dims_p[0] * csize + B_p * dims_p[-1] * osize
    cost = pl.CostEstimate(flops=int(flops), transcendentals=0,
                           bytes_accessed=int(param_bytes + io_bytes))
    est_vmem = (2 * bm * dims_p[0] * csize          # x tile (double buffered)
                + 2 * bm * dims_p[-1] * osize       # out tile (double buffered)
                + 2 * param_bytes                   # weights/biases (worst case 2 bufs)
                + 4 * bm * max(dims_p) * 4)         # f32 layer intermediates
    vmem_limit = int(max(16 << 20, min(2 * est_vmem, 48 << 20)))

    out_shape = jax.ShapeDtypeStruct((B_p, dims_p[-1]), out_dtype)
    args = [x_p]
    for w, b in zip(w_p, b_p):
        args += [w, b]

    def build(single_buffer_weights):
        # Weights/biases never change across the batch grid -> single-buffer them.
        const_kw = ({"pipeline_mode": pl.Buffered(1)}
                    if single_buffer_weights else {})
        in_specs = [pl.BlockSpec((bm, dims_p[0]), lambda i: (i, 0))]
        for w, b in zip(w_p, b_p):
            in_specs.append(pl.BlockSpec(w.shape, lambda i: (0, 0), **const_kw))
            in_specs.append(pl.BlockSpec(b.shape, lambda i: (0, 0), **const_kw))
        out_specs = pl.BlockSpec((bm, dims_p[-1]), lambda i: (i, 0))
        kernel = functools.partial(_mlp_kernel, num_layers=num_layers,
                                   final_activation=final_activation)
        return pl.pallas_call(
            kernel,
            out_shape=out_shape,
            grid=grid,
            in_specs=in_specs,
            out_specs=out_specs,
            compiler_params=pltpu.CompilerParams(
                dimension_semantics=("parallel",),
                vmem_limit_bytes=vmem_limit,
            ),
            cost_estimate=cost,
        )

    try:
        out_p = build(single_buffer_weights=True)(*args)
    except Exception:
        # Fallback if this jax build rejects pipeline_mode / Buffered(1) on the
        # main pallas_call grid: use default double buffering (correctness identical).
        out_p = build(single_buffer_weights=False)(*args)

    return out_p[:B, :d_out]


def init_mlp_params(key, dims):
    """Deterministic init matching nn.Linear shapes: W_i: (dims[i], dims[i+1]), b_i: (dims[i+1],)."""
    weights, biases = [], []
    for d_in, d_out in zip(dims[:-1], dims[1:]):
        kw, kb, key = jax.random.split(key, 3)
        bound = 1.0 / jnp.sqrt(d_in)
        # PyTorch Linear stores (out, in); we store transposed (in, out) for the kernel.
        w = jax.random.uniform(kw, (d_in, d_out), jnp.float32, -bound, bound)
        b = jax.random.uniform(kb, (d_out,), jnp.float32, -bound, bound)
        weights.append(w)
        biases.append(b)
    return weights, biases


def mlp_reference(x, weights, biases, final_activation=False):
    if isinstance(x, (tuple, list)):
        x = jnp.concatenate(x, axis=-1)
    h = x
    for i, (w, b) in enumerate(zip(weights, biases)):
        h = h @ w + b
        is_last = i == len(weights) - 1
        if (not is_last) or final_activation:
            h = _leaky_relu(h)
    return h


if __name__ == "__main__":
    key = jax.random.PRNGKey(0)

    # dims must have at least 3 entries: (input, *hiddens, output)
    dims = (48, 32, 32, 16)
    kx1, kx2, kx3, kp = jax.random.split(key, 4)
    weights, biases = init_mlp_params(kp, dims)

    # 1) Tuple input (concatenated on last dim), tiny batch, f32 path.
    B1 = 8
    x_parts = (
        jax.random.normal(kx1, (B1, 16), jnp.float32),
        jax.random.normal(kx2, (B1, 32), jnp.float32),
    )
    out1 = jax.block_until_ready(mlp_forward(x_parts, weights, biases))
    ref1 = mlp_reference(x_parts, weights, biases)
    assert out1.shape == (B1, dims[-1])
    assert jnp.allclose(out1, ref1, atol=1e-4, rtol=1e-4), "f32 small-batch mismatch"

    # 2) Larger batch -> 2 grid tiles of bm=128 ("parallel" axis uses both v7x TCs),
    #    with final activation enabled.
    B2 = 256
    x2 = jax.random.normal(kx3, (B2, dims[0]), jnp.float32)
    out2 = jax.block_until_ready(
        mlp_forward(x2, weights, biases, final_activation=True, bm=128))
    ref2 = mlp_reference(x2, weights, biases, final_activation=True)
    assert out2.shape == (B2, dims[-1])
    assert jnp.allclose(out2, ref2, atol=1e-4, rtol=1e-4), "f32 multi-tile mismatch"

    # 3) bf16 MXU path (bf16 weights/activations, f32 accumulation).
    out3 = jax.block_until_ready(
        mlp_forward(x2, weights, biases, bm=128, compute_dtype=jnp.bfloat16))
    ref3 = mlp_reference(x2, weights, biases)
    assert jnp.allclose(out3, ref3, atol=5e-2, rtol=5e-2), "bf16 path mismatch"

    print("KERNEL_OK")
</pallas_src>

<mosaic_0001>
module attributes {stable_mosaic.version = 11 : i64} {
  func.func @_mlp_kernel(%arg0: i32, %arg1: memref<128x128xf32, #tpu.memory_space<vmem>>, %arg2: memref<128x128xf32, #tpu.memory_space<vmem>>, %arg3: memref<1x128xf32, #tpu.memory_space<vmem>>, %arg4: memref<128x128xf32, #tpu.memory_space<vmem>>, %arg5: memref<1x128xf32, #tpu.memory_space<vmem>>, %arg6: memref<128x128xf32, #tpu.memory_space<vmem>>, %arg7: memref<1x128xf32, #tpu.memory_space<vmem>>, %arg8: memref<128x128xf32, #tpu.memory_space<vmem>>) attributes {dimension_semantics = [#tpu.dimension_semantics<parallel>], iteration_bounds = array<i64: 1>, scalar_prefetch = 0 : i64, scratch_operands = 0 : i64, tpu.core_type = #tpu.core_type<tc>, window_params = [{transform_indices = @transform_0, window_bounds = array<i64: 128, 128>}, {pipeline_mode = #tpu.pipeline_mode<synchronous>, transform_indices = @transform_1, window_bounds = array<i64: 128, 128>}, {pipeline_mode = #tpu.pipeline_mode<synchronous>, transform_indices = @transform_2, window_bounds = array<i64: 1, 128>}, {pipeline_mode = #tpu.pipeline_mode<synchronous>, transform_indices = @transform_3, window_bounds = array<i64: 128, 128>}, {pipeline_mode = #tpu.pipeline_mode<synchronous>, transform_indices = @transform_4, window_bounds = array<i64: 1, 128>}, {pipeline_mode = #tpu.pipeline_mode<synchronous>, transform_indices = @transform_5, window_bounds = array<i64: 128, 128>}, {pipeline_mode = #tpu.pipeline_mode<synchronous>, transform_indices = @transform_6, window_bounds = array<i64: 1, 128>}, {transform_indices = @transform_7, window_bounds = array<i64: 128, 128>}]} {
    %c0 = arith.constant 0 : index
    %c0_0 = arith.constant 0 : index
    %0 = vector.load %arg1[%c0, %c0_0] : memref<128x128xf32, #tpu.memory_space<vmem>>, vector<128x128xf32>
    %c0_1 = arith.constant 0 : index
    %c0_2 = arith.constant 0 : index
    %1 = vector.load %arg2[%c0_1, %c0_2] : memref<128x128xf32, #tpu.memory_space<vmem>>, vector<128x128xf32>
    %c0_3 = arith.constant 0 : index
    %c0_4 = arith.constant 0 : index
    %2 = vector.load %arg3[%c0_3, %c0_4] : memref<1x128xf32, #tpu.memory_space<vmem>>, vector<1x128xf32>
    %cst = arith.constant dense<0.000000e+00> : vector<128x128xf32>
    %3 = tpu.matmul %0, %1, %cst {dimension_numbers = #tpu.dot_dimension_numbers<[1], [0], [0], [1], [0, 0, 1, 1], [], []>} : vector<128x128xf32>, vector<128x128xf32>, vector<128x128xf32> -> vector<128x128xf32>
    %4 = vector.broadcast %2 : vector<1x128xf32> to vector<128x128xf32>
    %5 = arith.addf %3, %4 : vector<128x128xf32>
    %cst_5 = arith.constant 0.000000e+00 : f32
    %6 = vector.broadcast %cst_5 : f32 to vector<128x128xf32>
    %7 = arith.cmpf oge, %5, %6 : vector<128x128xf32>
    %cst_6 = arith.constant 0.00999999977 : f32
    %8 = vector.broadcast %cst_6 : f32 to vector<128x128xf32>
    %9 = arith.mulf %8, %5 : vector<128x128xf32>
    %10 = arith.select %7, %5, %9 : vector<128x128xi1>, vector<128x128xf32>
    %c0_7 = arith.constant 0 : index
    %c0_8 = arith.constant 0 : index
    %11 = vector.load %arg4[%c0_7, %c0_8] : memref<128x128xf32, #tpu.memory_space<vmem>>, vector<128x128xf32>
    %c0_9 = arith.constant 0 : index
    %c0_10 = arith.constant 0 : index
    %12 = vector.load %arg5[%c0_9, %c0_10] : memref<1x128xf32, #tpu.memory_space<vmem>>, vector<1x128xf32>
    %cst_11 = arith.constant dense<0.000000e+00> : vector<128x128xf32>
    %13 = tpu.matmul %10, %11, %cst_11 {dimension_numbers = #tpu.dot_dimension_numbers<[1], [0], [0], [1], [0, 0, 1, 1], [], []>} : vector<128x128xf32>, vector<128x128xf32>, vector<128x128xf32> -> vector<128x128xf32>
    %14 = vector.broadcast %12 : vector<1x128xf32> to vector<128x128xf32>
    %15 = arith.addf %13, %14 : vector<128x128xf32>
    %cst_12 = arith.constant 0.000000e+00 : f32
    %16 = vector.broadcast %cst_12 : f32 to vector<128x128xf32>
    %17 = arith.cmpf oge, %15, %16 : vector<128x128xf32>
    %cst_13 = arith.constant 0.00999999977 : f32
    %18 = vector.broadcast %cst_13 : f32 to vector<128x128xf32>
    %19 = arith.mulf %18, %15 : vector<128x128xf32>
    %20 = arith.select %17, %15, %19 : vector<128x128xi1>, vector<128x128xf32>
    %c0_14 = arith.constant 0 : index
    %c0_15 = arith.constant 0 : index
    %21 = vector.load %arg6[%c0_14, %c0_15] : memref<128x128xf32, #tpu.memory_space<vmem>>, vector<128x128xf32>
    %c0_16 = arith.constant 0 : index
    %c0_17 = arith.constant 0 : index
    %22 = vector.load %arg7[%c0_16, %c0_17] : memref<1x128xf32, #tpu.memory_space<vmem>>, vector<1x128xf32>
    %cst_18 = arith.constant dense<0.000000e+00> : vector<128x128xf32>
    %23 = tpu.matmul %20, %21, %cst_18 {dimension_numbers = #tpu.dot_dimension_numbers<[1], [0], [0], [1], [0, 0, 1, 1], [], []>} : vector<128x128xf32>, vector<128x128xf32>, vector<128x128xf32> -> vector<128x128xf32>
    %24 = vector.broadcast %22 : vector<1x128xf32> to vector<128x128xf32>
    %25 = arith.addf %23, %24 : vector<128x128xf32>
    %c0_19 = arith.constant 0 : index
    %c0_20 = arith.constant 0 : index
    %26 = vector.load %arg8[%c0_19, %c0_20] : memref<128x128xf32, #tpu.memory_space<vmem>>, vector<128x128xf32>
    tpu.vector_store %arg8[%c0_19, %c0_20], %25 {strides = array<i32>} : memref<128x128xf32, #tpu.memory_space<vmem>>, vector<128x128xf32>,
    return
  }
  func.func @transform_0(%arg0: i32) -> (i32, i32) {
    %c0_i32 = arith.constant 0 : i32
    %c0_i32_0 = arith.constant 0 : i32
    return %arg0, %c0_i32 : i32, i32
  }
  func.func @transform_1(%arg0: i32) -> (i32, i32) {
    %c0_i32 = arith.constant 0 : i32
    %c0_i32_0 = arith.constant 0 : i32
    %c0_i32_1 = arith.constant 0 : i32
    return %c0_i32, %c0_i32_0 : i32, i32
  }
  func.func @transform_2(%arg0: i32) -> (i32, i32) {
    %c0_i32 = arith.constant 0 : i32
    %c0_i32_0 = arith.constant 0 : i32
    %c0_i32_1 = arith.constant 0 : i32
    return %c0_i32, %c0_i32_0 : i32, i32
  }
  func.func @transform_3(%arg0: i32) -> (i32, i32) {
    %c0_i32 = arith.constant 0 : i32
    %c0_i32_0 = arith.constant 0 : i32
    %c0_i32_1 = arith.constant 0 : i32
    return %c0_i32, %c0_i32_0 : i32, i32
  }
  func.func @transform_4(%arg0: i32) -> (i32, i32) {
    %c0_i32 = arith.constant 0 : i32
    %c0_i32_0 = arith.constant 0 : i32
    %c0_i32_1 = arith.constant 0 : i32
    return %c0_i32, %c0_i32_0 : i32, i32
  }
  func.func @transform_5(%arg0: i32) -> (i32, i32) {
    %c0_i32 = arith.constant 0 : i32
    %c0_i32_0 = arith.constant 0 : i32
    %c0_i32_1 = arith.constant 0 : i32
    return %c0_i32, %c0_i32_0 : i32, i32
  }
  func.func @transform_6(%arg0: i32) -> (i32, i32) {
    %c0_i32 = arith.constant 0 : i32
    %c0_i32_0 = arith.constant 0 : i32
    %c0_i32_1 = arith.constant 0 : i32
    return %c0_i32, %c0_i32_0 : i32, i32
  }
  func.func @transform_7(%arg0: i32) -> (i32, i32) {
    %c0_i32 = arith.constant 0 : i32
    %c0_i32_0 = arith.constant 0 : i32
    return %arg0, %c0_i32 : i32, i32
  }
}

module attributes {stable_mosaic.version = 11 : i64} {
  func.func @_mlp_kernel(%arg0: i32, %arg1: memref<128x128xf32, #tpu.memory_space<vmem>>, %arg2: memref<128x128xf32, #tpu.memory_space<vmem>>, %arg3: memref<1x128xf32, #tpu.memory_space<vmem>>, %arg4: memref<128x128xf32, #tpu.memory_space<vmem>>, %arg5: memref<1x128xf32, #tpu.memory_space<vmem>>, %arg6: memref<128x128xf32, #tpu.memory_space<vmem>>, %arg7: memref<1x128xf32, #tpu.memory_space<vmem>>, %arg8: memref<128x128xf32, #tpu.memory_space<vmem>>) attributes {dimension_semantics = [#tpu.dimension_semantics<parallel>], iteration_bounds = array<i64: 1>, scalar_prefetch = 0 : i64, scratch_operands = 0 : i64, tpu.core_type = #tpu.core_type<tc>, window_params = [{transform_indices = @transform_0, window_bounds = array<i64: 128, 128>}, {pipeline_mode = #tpu.pipeline_mode<synchronous>, transform_indices = @transform_1, window_bounds = array<i64: 128, 128>}, {pipeline_mode = #tpu.pipeline_mode<synchronous>, transform_indices = @transform_2, window_bounds = array<i64: 1, 128>}, {pipeline_mode = #tpu.pipeline_mode<synchronous>, transform_indices = @transform_3, window_bounds = array<i64: 128, 128>}, {pipeline_mode = #tpu.pipeline_mode<synchronous>, transform_indices = @transform_4, window_bounds = array<i64: 1, 128>}, {pipeline_mode = #tpu.pipeline_mode<synchronous>, transform_indices = @transform_5, window_bounds = array<i64: 128, 128>}, {pipeline_mode = #tpu.pipeline_mode<synchronous>, transform_indices = @transform_6, window_bounds = array<i64: 1, 128>}, {transform_indices = @transform_7, window_bounds = array<i64: 128, 128>}]} {
    %c0 = arith.constant 0 : index
    %c0_0 = arith.constant 0 : index
    %0 = vector.load %arg1[%c0, %c0_0] : memref<128x128xf32, #tpu.memory_space<vmem>>, vector<128x128xf32>
    %c0_1 = arith.constant 0 : index
    %c0_2 = arith.constant 0 : index
    %1 = vector.load %arg2[%c0_1, %c0_2] : memref<128x128xf32, #tpu.memory_space<vmem>>, vector<128x128xf32>
    %c0_3 = arith.constant 0 : index
    %c0_4 = arith.constant 0 : index
    %2 = vector.load %arg3[%c0_3, %c0_4] : memref<1x128xf32, #tpu.memory_space<vmem>>, vector<1x128xf32>
    %cst = arith.constant dense<0.000000e+00> : vector<128x128xf32>
    %3 = tpu.matmul %0, %1, %cst {dimension_numbers = #tpu.dot_dimension_numbers<[1], [0], [0], [1], [0, 0, 1, 1], [], []>} : vector<128x128xf32>, vector<128x128xf32>, vector<128x128xf32> -> vector<128x128xf32>
    %4 = vector.broadcast %2 : vector<1x128xf32> to vector<128x128xf32>
    %5 = arith.addf %3, %4 : vector<128x128xf32>
    %cst_5 = arith.constant 0.000000e+00 : f32
    %6 = vector.broadcast %cst_5 : f32 to vector<128x128xf32>
    %7 = arith.cmpf oge, %5, %6 : vector<128x128xf32>
    %cst_6 = arith.constant 0.00999999977 : f32
    %8 = vector.broadcast %cst_6 : f32 to vector<128x128xf32>
    %9 = arith.mulf %8, %5 : vector<128x128xf32>
    %10 = arith.select %7, %5, %9 : vector<128x128xi1>, vector<128x128xf32>
    %c0_7 = arith.constant 0 : index
    %c0_8 = arith.constant 0 : index
    %11 = vector.load %arg4[%c0_7, %c0_8] : memref<128x128xf32, #tpu.memory_space<vmem>>, vector<128x128xf32>
    %c0_9 = arith.constant 0 : index
    %c0_10 = arith.constant 0 : index
    %12 = vector.load %arg5[%c0_9, %c0_10] : memref<1x128xf32, #tpu.memory_space<vmem>>, vector<1x128xf32>
    %cst_11 = arith.constant dense<0.000000e+00> : vector<128x128xf32>
    %13 = tpu.matmul %10, %11, %cst_11 {dimension_numbers = #tpu.dot_dimension_numbers<[1], [0], [0], [1], [0, 0, 1, 1], [], []>} : vector<128x128xf32>, vector<128x128xf32>, vector<128x128xf32> -> vector<128x128xf32>
    %14 = vector.broadcast %12 : vector<1x128xf32> to vector<128x128xf32>
    %15 = arith.addf %13, %14 : vector<128x128xf32>
    %cst_12 = arith.constant 0.000000e+00 : f32
    %16 = vector.broadcast %cst_12 : f32 to vector<128x128xf32>
    %17 = arith.cmpf oge, %15, %16 : vector<128x128xf32>
    %cst_13 = arith.constant 0.00999999977 : f32
    %18 = vector.broadcast %cst_13 : f32 to vector<128x128xf32>
    %19 = arith.mulf %18, %15 : vector<128x128xf32>
    %20 = arith.select %17, %15, %19 : vector<128x128xi1>, vector<128x128xf32>
    %c0_14 = arith.constant 0 : index
    %c0_15 = arith.constant 0 : index
    %21 = vector.load %arg6[%c0_14, %c0_15] : memref<128x128xf32, #tpu.memory_space<vmem>>, vector<128x128xf32>
    %c0_16 = arith.constant 0 : index
    %c0_17 = arith.constant 0 : index
    %22 = vector.load %arg7[%c0_16, %c0_17] : memref<1x128xf32, #tpu.memory_space<vmem>>, vector<1x128xf32>
    %cst_18 = arith.constant dense<0.000000e+00> : vector<128x128xf32>
    %23 = tpu.matmul %20, %21, %cst_18 {dimension_numbers = #tpu.dot_dimension_numbers<[1], [0], [0], [1], [0, 0, 1, 1], [], []>} : vector<128x128xf32>, vector<128x128xf32>, vector<128x128xf32> -> vector<128x128xf32>
    %24 = vector.broadcast %22 : vector<1x128xf32> to vector<128x128xf32>
    %25 = arith.addf %23, %24 : vector<128x128xf32>
    %c0_19 = arith.constant 0 : index
    %c0_20 = arith.constant 0 : index
    %26 = vector.load %arg8[%c0_19, %c0_20] : memref<128x128xf32, #tpu.memory_space<vmem>>, vector<128x128xf32>
    tpu.vector_store %arg8[%c0_19, %c0_20], %25 {strides = array<i32>} : memref<128x128xf32, #tpu.memory_space<vmem>>, vector<128x128xf32>,
    return
  }
  func.func @transform_0(%arg0: i32) -> (i32, i32) {
    %c0_i32 = arith.constant 0 : i32
    %c0_i32_0 = arith.constant 0 : i32
    return %arg0, %c0_i32 : i32, i32
  }
  func.func @transform_1(%arg0: i32) -> (i32, i32) {
    %c0_i32 = arith.constant 0 : i32
    %c0_i32_0 = arith.constant 0 : i32
    %c0_i32_1 = arith.constant 0 : i32
    return %c0_i32, %c0_i32_0 : i32, i32
  }
  func.func @transform_2(%arg0: i32) -> (i32, i32) {
    %c0_i32 = arith.constant 0 : i32
    %c0_i32_0 = arith.constant 0 : i32
    %c0_i32_1 = arith.constant 0 : i32
    return %c0_i32, %c0_i32_0 : i32, i32
  }
  func.func @transform_3(%arg0: i32) -> (i32, i32) {
    %c0_i32 = arith.constant 0 : i32
    %c0_i32_0 = arith.constant 0 : i32
    %c0_i32_1 = arith.constant 0 : i32
    return %c0_i32, %c0_i32_0 : i32, i32
  }
  func.func @transform_4(%arg0: i32) -> (i32, i32) {
    %c0_i32 = arith.constant 0 : i32
    %c0_i32_0 = arith.constant 0 : i32
    %c0_i32_1 = arith.constant 0 : i32
    return %c0_i32, %c0_i32_0 : i32, i32
  }
  func.func @transform_5(%arg0: i32) -> (i32, i32) {
    %c0_i32 = arith.constant 0 : i32
    %c0_i32_0 = arith.constant 0 : i32
    %c0_i32_1 = arith.constant 0 : i32
    return %c0_i32, %c0_i32_0 : i32, i32
  }
  func.func @transform_6(%arg0: i32) -> (i32, i32) {
    %c0_i32 = arith.constant 0 : i32
    %c0_i32_0 = arith.constant 0 : i32
    %c0_i32_1 = arith.constant 0 : i32
    return %c0_i32, %c0_i32_0 : i32, i32
  }
  func.func @transform_7(%arg0: i32) -> (i32, i32) {
    %c0_i32 = arith.constant 0 : i32
    %c0_i32_0 = arith.constant 0 : i32
    return %arg0, %c0_i32 : i32, i32
  }
}

</mosaic_0001>

<bundles_post_ra>
// kernel: tpu_custom_call.1
= control target key start
LH: loop header
LB: loop body
LE: loop exit
PB: predicated region body
PF: predicated region fallthrough
CT: control target
= control target key end

     0   :  { %12 = vsyncpa [#allocation3], 0  ;;  %s1335_s0 = inlined_call_operand.hbm [shape: f32[128,128], index: 0, kind: input, shape index: {}]   ;;  %s1336_s1 = inlined_call_operand.hbm [shape: f32[128,128], index: 1, kind: input, shape index: {}]   ;;  %s1337_s2 = inlined_call_operand.vmem [shape: f32[1,128], index: 2, kind: input, shape index: {}]   ;;  %s1338_s3 = inlined_call_operand.hbm [shape: f32[128,128], index: 3, kind: input, shape index: {}]   ;;  %s1339_s4 = inlined_call_operand.vmem [shape: f32[1,128], index: 4, kind: input, shape index: {}]   ;;  %s1340_s5 = inlined_call_operand.hbm [shape: f32[128,128], index: 5, kind: input, shape index: {}]   ;;  %s1341_s6 = inlined_call_operand.vmem [shape: f32[1,128], index: 6, kind: input, shape index: {}]   ;;  %s1342_s7 = inlined_call_operand.hbm [shape: f32[128,128], index: 7, kind: output, shape index: {}]  }
   0x1   :  { %13 = vsyncpa [#allocation6], 0 }
   0x2   :  { %14 = vsyncpa [#allocation9], 0 }
   0x3   :  { %15 = vsyncpa [#allocation4], 0  ;;  %s1147_s24 = smov [#allocation5]   ;;  %s1148_s26 = smov [#allocation2]  }
   0x4   :  { %s33_s25 = sshll.u32 %s1147_s24, 4  ;;  %s21_s27 = sshll.u32 %s1148_s26, 4  ;;  %s34_s25 = int_to_ptr.vmem [resolvable:$true] %s33_s25  ;;  %s22_s27 = int_to_ptr.vmem [resolvable:$true] %s21_s27 }
   0x5   :  { %s1047_s28 = scalar_lea.vmem %s34_s25, 2048  ;;  %p1052_p1 = scmp.lt.s32.totalorder %s34_s25, %s34_s25 }
   0x6   :  { %p1048_p0 = scmp.ne.s32.totalorder %s34_s25, %s1047_s28  ;;  %p1053_p2 = scmp.lt.s32.totalorder %s1047_s28, %s1047_s28 }
   0x8   :  { %p1054_p3 = por %p1053_p2, %p1052_p1 }
   0xa   :  { %p1055_p4 = pnand %p1054_p3, %p1048_p0 }
   0xc   :  { %1058 = shalt.err (!%p1055_p4)
}
   0xd   :  { %s1149_s29 = smov 128   ;;  %s1150_s30 = smov 8  }
   0xe   :  { %39 = dma.hbm_to_vmem [thread:$0]  %s1336_s1, 2048, %s34_s25, [#allocation6], %s1149_s29, %s1149_s29, %s1150_s30  }
   0xf   :  { %s1067_s10 = scalar_lea.vmem %s22_s27, 2048  ;;  %p1072_p6 = scmp.lt.s32.totalorder %s22_s27, %s22_s27 }
  0x10   :  { %p1068_p5 = scmp.ne.s32.totalorder %s22_s27, %s1067_s10  ;;  %p1073_p7 = scmp.lt.s32.totalorder %s1067_s10, %s1067_s10 }
  0x12   :  { %p1074_p8 = por %p1073_p7, %p1072_p6 }
  0x14   :  { %p1075_p9 = pnand %p1074_p8, %p1068_p5 }
  0x16   :  { %1078 = shalt.err (!%p1075_p9)
}
  0x17   :  { %27 = dma.hbm_to_vmem [thread:$0]  %s1335_s0, 2048, %s22_s27, [#allocation3], %s1149_s29, %s1149_s29, %s1150_s30  }
  0x18   :  { %s1151_s13 = smov [#allocation7]   ;;  %s1152_s15 = smov [#allocation8]  }
  0x19   :  { %s47_s14 = sshll.u32 %s1151_s13, 4  ;;  %s61_s16 = sshll.u32 %s1152_s15, 4  ;;  %s48_s14 = int_to_ptr.vmem [resolvable:$true] %s47_s14  ;;  %s62_s16 = int_to_ptr.vmem [resolvable:$true] %s61_s16 }
  0x1a   :  { %s1087_s1 = scalar_lea.vmem %s48_s14, 2048  ;;  %p1092_p11 = scmp.lt.s32.totalorder %s48_s14, %s48_s14 }
  0x1b   :  { %p1088_p10 = scmp.ne.s32.totalorder %s48_s14, %s1087_s1  ;;  %p1093_p12 = scmp.lt.s32.totalorder %s1087_s1, %s1087_s1 }
  0x1d   :  { %p1094_p13 = por %p1093_p12, %p1092_p11 }
  0x1f   :  { %p1095_p0 = pnand %p1094_p13, %p1088_p10 }
  0x21   :  { %1098 = shalt.err (!%p1095_p0)
}
  0x22   :  { %53 = dma.hbm_to_vmem [thread:$0]  %s1338_s3, 2048, %s48_s14, [#allocation6], %s1149_s29, %s1149_s29, %s1150_s30  }
  0x23   :  { %s1107_s0 = scalar_lea.vmem %s62_s16, 2048  ;;  %p1112_p2 = scmp.lt.s32.totalorder %s62_s16, %s62_s16 }
  0x24   :  { %p1108_p1 = scmp.ne.s32.totalorder %s62_s16, %s1107_s0  ;;  %p1113_p3 = scmp.lt.s32.totalorder %s1107_s0, %s1107_s0 }
  0x26   :  { %p1114_p4 = por %p1113_p3, %p1112_p2 }
  0x28   :  { %p1115_p5 = pnand %p1114_p4, %p1108_p1 }
  0x2a   :  { %1118 = shalt.err (!%p1115_p5)
}
  0x2b   :  { %67 = dma.hbm_to_vmem [thread:$0]  %s1340_s5, 2048, %s62_s16, [#allocation9], %s1149_s29, %s1149_s29, %s1150_s30  }
  0x2c   :  { %1139 = dma.done.wait [#allocation3], 2048  }
  0x2d   :  { %1140 = vsyncadd [#allocation3], 4294965248 }
  0x2e   :  { %1141 = dma.done.wait [#allocation6], 4096  }
  0x2f   :  { %1142 = vsyncadd [#allocation6], 4294963200 }
  0x30   :  { %1143 = dma.done.wait [#allocation9], 2048  }
  0x31   :  { %1144 = vsyncadd [#allocation9], 4294965248  ;;  %v113_v0 = vld [vmem:[#allocation5 + $0x78] sm:$0xff]  ;;  %v112_v1 = vld [vmem:[#allocation5 + $0x70] sm:$0xff] }
  0x32   :  { %832 = vmatprep.subr.mxu0 %v113_v0  ;;  %v111_v2 = vld [vmem:[#allocation5 + $0x68] sm:$0xff]  ;;  %v110_v3 = vld [vmem:[#allocation5 + $0x60] sm:$0xff]  ;;  %v109_v5 = vld [vmem:[#allocation5 + $0x58] sm:$0xff] }
  0x33   :  { %833 = vmatpush3.msra.mxu0 %v113_v0  ;;  %v82_v4 = vld [vmem:[#allocation2] sm:$0xff]  ;;  %v108_v6 = vld [vmem:[#allocation5 + $0x50] sm:$0xff]  ;;  %v107_v7 = vld [vmem:[#allocation5 + $0x48] sm:$0xff] }
  0x34   :  { %834 = vmatprep.subr.mxu0 %v112_v1  ;;  %864 = vmatprep.mubr.f32.mxu0 %v82_v4  ;;  %v329_v8 = vld [vmem:[#allocation7 + $0x78] sm:$0xff]  ;;  %v328_v9 = vld [vmem:[#allocation7 + $0x70] sm:$0xff]  ;;  %v106_v10 = vld [vmem:[#allocation5 + $0x40] sm:$0xff] }
  0x35   :  { %835 = vmatpush3.msra.mxu0 %v112_v1  ;;  %888 = vmatprep.subr.mxu1 %v329_v8  ;;  %v327_v11 = vld [vmem:[#allocation7 + $0x68] sm:$0xff]  ;;  %v105_v12 = vld [vmem:[#allocation5 + $0x38] sm:$0xff]  ;;  %v326_v13 = vld [vmem:[#allocation7 + $0x60] sm:$0xff] }
  0x36   :  { %836 = vmatprep.subr.mxu0 %v111_v2  ;;  %889 = vmatpush3.msra.mxu1 %v329_v8  ;;  %v104_v14 = vld [vmem:[#allocation5 + $0x30] sm:$0xff]  ;;  %v325_v15 = vld [vmem:[#allocation7 + $0x58] sm:$0xff]  ;;  %v103_v16 = vld [vmem:[#allocation5 + $0x28] sm:$0xff] }
  0x37   :  { %837 = vmatpush3.msra.mxu0 %v111_v2  ;;  %890 = vmatprep.subr.mxu1 %v328_v9  ;;  %v324_v17 = vld [vmem:[#allocation7 + $0x50] sm:$0xff]  ;;  %v102_v18 = vld [vmem:[#allocation5 + $0x20] sm:$0xff]  ;;  %v323_v19 = vld [vmem:[#allocation7 + $0x48] sm:$0xff] }
  0x38   :  { %838 = vmatprep.subr.mxu0 %v110_v3  ;;  %891 = vmatpush3.msra.mxu1 %v328_v9  ;;  %v101_v20 = vld [vmem:[#allocation5 + $0x18] sm:$0xff]  ;;  %v322_v21 = vld [vmem:[#allocation7 + $0x40] sm:$0xff]  ;;  %v100_v22 = vld [vmem:[#allocation5 + $0x10] sm:$0xff] }
  0x39   :  { %839 = vmatpush3.msra.mxu0 %v110_v3  ;;  %892 = vmatprep.subr.mxu1 %v327_v11  ;;  %v321_v23 = vld [vmem:[#allocation7 + $0x38] sm:$0xff]  ;;  %v99_v24 = vld [vmem:[#allocation5 + $0x8] sm:$0xff]  ;;  %v320_v25 = vld [vmem:[#allocation7 + $0x30] sm:$0xff] }
  0x3a   :  { %840 = vmatprep.subr.mxu0 %v109_v5  ;;  %893 = vmatpush3.msra.mxu1 %v327_v11  ;;  %v98_v26 = vld [vmem:[#allocation5] sm:$0xff]  ;;  %v319_v27 = vld [vmem:[#allocation7 + $0x28] sm:$0xff]  ;;  %v84_v30 = vld [vmem:[#allocation2 + $0x10] sm:$0xff] }
  0x3b   :  { %841 = vmatpush3.msra.mxu0 %v109_v5  ;;  %894 = vmatprep.subr.mxu1 %v326_v13  ;;  %v83_v28 = vld [vmem:[#allocation2 + $0x8] sm:$0xff]  ;;  %v318_v29 = vld [vmem:[#allocation7 + $0x20] sm:$0xff]  ;;  %v85_v31 = vld [vmem:[#allocation2 + $0x18] sm:$0xff] }
  0x3c   :  { %842 = vmatprep.subr.mxu0 %v108_v6  ;;  %895 = vmatpush3.msra.mxu1 %v326_v13  ;;  %v86_v32 = vld [vmem:[#allocation2 + $0x20] sm:$0xff]  ;;  %v87_v33 = vld [vmem:[#allocation2 + $0x28] sm:$0xff]  ;;  %v88_v34 = vld [vmem:[#allocation2 + $0x30] sm:$0xff] }
  0x3d   :  { %843 = vmatpush3.msra.mxu0 %v108_v6  ;;  %896 = vmatprep.subr.mxu1 %v325_v15  ;;  %v89_v35 = vld [vmem:[#allocation2 + $0x38] sm:$0xff]  ;;  %v90_v36 = vld [vmem:[#allocation2 + $0x40] sm:$0xff]  ;;  %v91_v37 = vld [vmem:[#allocation2 + $0x48] sm:$0xff] }
  0x3e   :  { %844 = vmatprep.subr.mxu0 %v107_v7  ;;  %897 = vmatpush3.msra.mxu1 %v325_v15  ;;  %v92_v38 = vld [vmem:[#allocation2 + $0x50] sm:$0xff]  ;;  %v93_v39 = vld [vmem:[#allocation2 + $0x58] sm:$0xff]  ;;  %v94_v40 = vld [vmem:[#allocation2 + $0x60] sm:$0xff] }
  0x3f   :  { %845 = vmatpush3.msra.mxu0 %v107_v7  ;;  %898 = vmatprep.subr.mxu1 %v324_v17  ;;  %v95_v41 = vld [vmem:[#allocation2 + $0x68] sm:$0xff]  ;;  %v96_v42 = vld [vmem:[#allocation2 + $0x70] sm:$0xff]  ;;  %v97_v43 = vld [vmem:[#allocation2 + $0x78] sm:$0xff] }
  0x40   :  { %846 = vmatprep.subr.mxu0 %v106_v10  ;;  %899 = vmatpush3.msra.mxu1 %v324_v17  ;;  %v317_v44 = vld [vmem:[#allocation7 + $0x18] sm:$0xff]  ;;  %v316_v45 = vld [vmem:[#allocation7 + $0x10] sm:$0xff]  ;;  %v315_v46 = vld [vmem:[#allocation7 + $0x8] sm:$0xff] }
  0x41   :  { %847 = vmatpush3.msra.mxu0 %v106_v10  ;;  %900 = vmatprep.subr.mxu1 %v323_v19  ;;  %v314_v47 = vld [vmem:[#allocation7] sm:$0xff]  ;;  %v545_v48 = vld [vmem:[#allocation8 + $0x78] sm:$0xff]  ;;  %v1218_v49 = vld [vmem:[#allocation8 + $0x70] sm:$0xff] }
  0x42   :  { %848 = vmatprep.subr.mxu0 %v105_v12  ;;  %901 = vmatpush3.msra.mxu1 %v323_v19  ;;  %v1220_v50 = vld [vmem:[#allocation8 + $0x68] sm:$0xff]  ;;  %v1224_v51 = vld [vmem:[#allocation8 + $0x60] sm:$0xff]  ;;  %v1228_v52 = vld [vmem:[#allocation8 + $0x58] sm:$0xff] }
  0x43   :  { %849 = vmatpush3.msra.mxu0 %v105_v12  ;;  %902 = vmatprep.subr.mxu1 %v322_v21  ;;  %v1232_v53 = vld [vmem:[#allocation8 + $0x50] sm:$0xff]  ;;  %v1236_v54 = vld [vmem:[#allocation8 + $0x48] sm:$0xff]  ;;  %v1240_v55 = vld [vmem:[#allocation8 + $0x40] sm:$0xff] }
  0x44   :  { %850 = vmatprep.subr.mxu0 %v104_v14  ;;  %903 = vmatpush3.msra.mxu1 %v322_v21  ;;  %v1244_v56 = vld [vmem:[#allocation8 + $0x38] sm:$0xff]  ;;  %v1248_v57 = vld [vmem:[#allocation8 + $0x30] sm:$0xff]  ;;  %v1252_v58 = vld [vmem:[#allocation8 + $0x28] sm:$0xff] }
  0x45   :  { %851 = vmatpush3.msra.mxu0 %v104_v14  ;;  %904 = vmatprep.subr.mxu1 %v321_v23  ;;  %v1256_v59 = vld [vmem:[#allocation8 + $0x20] sm:$0xff] }
  0x46   :  { %852 = vmatprep.subr.mxu0 %v103_v16  ;;  %905 = vmatpush3.msra.mxu1 %v321_v23  ;;  %v1265_v60 = vld [vmem:[%s1337_s2] ss:$0 sm:$0xff] }
  0x47   :  { %853 = vmatpush3.msra.mxu0 %v103_v16  ;;  %906 = vmatprep.subr.mxu1 %v320_v25 }
  0x48   :  { %854 = vmatprep.subr.mxu0 %v102_v18  ;;  %907 = vmatpush3.msra.mxu1 %v320_v25 }
  0x49   :  { %855 = vmatpush3.msra.mxu0 %v102_v18  ;;  %908 = vmatprep.subr.mxu1 %v319_v27 }
  0x4a   :  { %856 = vmatprep.subr.mxu0 %v101_v20  ;;  %909 = vmatpush3.msra.mxu1 %v319_v27 }
  0x4b   :  { %857 = vmatpush3.msra.mxu0 %v101_v20  ;;  %910 = vmatprep.subr.mxu1 %v318_v29 }
  0x4c   :  { %858 = vmatprep.subr.mxu0 %v100_v22  ;;  %911 = vmatpush3.msra.mxu1 %v318_v29 }
  0x4d   :  { %859 = vmatpush3.msra.mxu0 %v100_v22  ;;  %912 = vmatprep.subr.mxu1 %v317_v44 }
  0x4e   :  { %860 = vmatprep.subr.mxu0 %v99_v24  ;;  %913 = vmatpush3.msra.mxu1 %v317_v44 }
  0x4f   :  { %861 = vmatpush3.msra.mxu0 %v99_v24  ;;  %914 = vmatprep.subr.mxu1 %v316_v45 }
  0x50   :  { %862 = vmatprep.subr.mxu0 %v98_v26  ;;  %915 = vmatpush3.msra.mxu1 %v316_v45 }
  0x51   :  { %863 = vmatpush3.msra.mxu0 %v98_v26  ;;  %916 = vmatprep.subr.mxu1 %v315_v46 }
  0x52   :  { %865 = vmatmul.mubr.f32.vlgmr.msra.gmra.mxu0 %v83_v28  ;;  %917 = vmatpush3.msra.mxu1 %v315_v46 }
  0x53   :  { %867 = vmatprep.mubr.f32.mxu0 %v84_v30  ;;  %918 = vmatprep.subr.mxu1 %v314_v47 }
  0x54   :  { %919 = vmatpush3.msra.mxu1 %v314_v47  ;;  %944 = vmatprep.subr.mxu0 %v545_v48 }
  0x55   :  { %1000 = vmatprep.subr.mxu1 %v545_v48  ;;  %945 = vmatpush3.msra.mxu0 %v545_v48 }
  0x56   :  { %868 = vmatmul.mubr.f32.gmra.mxu0 %v85_v31  ;;  %946 = vmatprep.subr.mxu0 %v1218_v49 }
  0x57   :  { %870 = vmatprep.mubr.f32.mxu0 %v86_v32  ;;  %947 = vmatpush3.msra.mxu0 %v1218_v49 }
  0x58   :  { %948 = vmatprep.subr.mxu0 %v1220_v50 }
  0x59   :  { %949 = vmatpush3.msra.mxu0 %v1220_v50 }
  0x5a   :  { %871 = vmatmul.mubr.f32.gmra.mxu0 %v87_v33  ;;  %950 = vmatprep.subr.mxu0 %v1224_v51 }
  0x5b   :  { %873 = vmatprep.mubr.f32.mxu0 %v88_v34  ;;  %951 = vmatpush3.msra.mxu0 %v1224_v51 }
  0x5c   :  { %952 = vmatprep.subr.mxu0 %v1228_v52 }
  0x5d   :  { %953 = vmatpush3.msra.mxu0 %v1228_v52 }
  0x5e   :  { %874 = vmatmul.mubr.f32.gmra.mxu0 %v89_v35  ;;  %954 = vmatprep.subr.mxu0 %v1232_v53 }
  0x5f   :  { %876 = vmatprep.mubr.f32.mxu0 %v90_v36  ;;  %955 = vmatpush3.msra.mxu0 %v1232_v53 }
  0x60   :  { %956 = vmatprep.subr.mxu0 %v1236_v54 }
  0x61   :  { %957 = vmatpush3.msra.mxu0 %v1236_v54 }
  0x62   :  { %877 = vmatmul.mubr.f32.gmra.mxu0 %v91_v37  ;;  %958 = vmatprep.subr.mxu0 %v1240_v55 }
  0x63   :  { %879 = vmatprep.mubr.f32.mxu0 %v92_v38  ;;  %959 = vmatpush3.msra.mxu0 %v1240_v55 }
  0x64   :  { %960 = vmatprep.subr.mxu0 %v1244_v56 }
  0x65   :  { %961 = vmatpush3.msra.mxu0 %v1244_v56 }
  0x66   :  { %880 = vmatmul.mubr.f32.gmra.mxu0 %v93_v39  ;;  %962 = vmatprep.subr.mxu0 %v1248_v57 }
  0x67   :  { %882 = vmatprep.mubr.f32.mxu0 %v94_v40  ;;  %963 = vmatpush3.msra.mxu0 %v1248_v57 }
  0x68   :  { %964 = vmatprep.subr.mxu0 %v1252_v58 }
  0x69   :  { %965 = vmatpush3.msra.mxu0 %v1252_v58 }
  0x6a   :  { %883 = vmatmul.mubr.f32.gmra.mxu0 %v95_v41  ;;  %966 = vmatprep.subr.mxu0 %v1256_v59 }
  0x6b   :  { %885 = vmatprep.mubr.f32.mxu0 %v96_v42  ;;  %967 = vmatpush3.msra.mxu0 %v1256_v59 }
  0x6e   :  { %886 = vmatmul.mubr.f32.gmra.mxu0 %v97_v43 }
 0x112   :  { %v866_v61 = vpop.f32.mrf.mxu0 }
 0x113   :  { %v193_v62 = vadd.f32 %v866_v61, %v1265_v60 }
 0x114   :  { %v187_v63 = vpop.f32.mrf.mxu0 }
 0x115   :  { %v188_v0 = vadd.f32 %v1265_v60, %v187_v63  ;;  %v283_v1 = vmul.f32 0.01, %v193_v62  ;;  %vm267_vm1 = vcmp.ge.f32.partialorder %v193_v62, 0.0 }
 0x116   :  { %v869_v2 = vpop.f32.mrf.mxu0 }
 0x117   :  { %v203_v3 = vadd.f32 %v869_v2, %v1265_v60  ;;  %vm266_vm0 = vcmp.ge.f32.partialorder %v188_v0, 0.0  ;;  %v282_v4 = vmul.f32 0.01, %v188_v0  ;;  %v299_v10 = vsel %vm267_vm1, %v193_v62, %v283_v1  ;;  %v1308_v1 = vld [vmem:[%s1339_s4] ss:$0 sm:$0xff] }
 0x118   :  { %v197_v5 = vpop.f32.mrf.mxu0 }
 0x119   :  { %v198_v6 = vadd.f32 %v1265_v60, %v197_v5  ;;  %v298_v7 = vsel %vm266_vm0, %v188_v0, %v282_v4  ;;  %v285_v8 = vmul.f32 0.01, %v203_v3  ;;  %vm269_vm3 = vcmp.ge.f32.partialorder %v203_v3, 0.0  ;;  %v533_v0 = vld [vmem:[#allocation8 + $0x18] sm:$0xff] }
 0x11a   :  { %v872_v9 = vpop.f32.mrf.mxu0  ;;  %920 = vmatprep.mubr.f32.mxu1 %v298_v7  ;;  %968 = vmatprep.subr.mxu0 %v533_v0 }
 0x11b   :  { %v284_v11 = vmul.f32 0.01, %v198_v6  ;;  %v213_v12 = vadd.f32 %v872_v9, %v1265_v60  ;;  %921 = vmatmul.mubr.f32.vlgmr.msra.gmra.mxu1 %v299_v10  ;;  %vm268_vm2 = vcmp.ge.f32.partialorder %v198_v6, 0.0  ;;  %v301_v18 = vsel %vm269_vm3, %v203_v3, %v285_v8  ;;  %969 = vmatpush3.msra.mxu0 %v533_v0 }
 0x11c   :  { %v207_v13 = vpop.f32.mrf.mxu0  ;;  %1016 = vmatpush3.msra.mxu1 %v545_v48 }
 0x11d   :  { %v208_v14 = vadd.f32 %v1265_v60, %v207_v13  ;;  %v300_v15 = vsel %vm268_vm2, %v198_v6, %v284_v11  ;;  %1001 = vmatprep.subr.mxu1 %v1218_v49  ;;  %v287_v16 = vmul.f32 0.01, %v213_v12  ;;  %vm271_vm5 = vcmp.ge.f32.partialorder %v213_v12, 0.0 }
 0x11e   :  { %v875_v17 = vpop.f32.mrf.mxu0  ;;  %923 = vmatprep.mubr.f32.mxu1 %v300_v15  ;;  %1017 = vmatpush3.msra.mxu1 %v1218_v49 }
 0x11f   :  { %v286_v19 = vmul.f32 0.01, %v208_v14  ;;  %v223_v20 = vadd.f32 %v875_v17, %v1265_v60  ;;  %924 = vmatmul.mubr.f32.gmra.mxu1 %v301_v18  ;;  %vm270_vm4 = vcmp.ge.f32.partialorder %v208_v14, 0.0  ;;  %1002 = vmatprep.subr.mxu1 %v1220_v50  ;;  %v303_v26 = vsel %vm271_vm5, %v213_v12, %v287_v16 }
 0x120   :  { %v217_v21 = vpop.f32.mrf.mxu0  ;;  %1018 = vmatpush3.msra.mxu1 %v1220_v50 }
 0x121   :  { %v218_v22 = vadd.f32 %v1265_v60, %v217_v21  ;;  %v302_v23 = vsel %vm270_vm4, %v208_v14, %v286_v19  ;;  %1003 = vmatprep.subr.mxu1 %v1224_v51  ;;  %v289_v24 = vmul.f32 0.01, %v223_v20  ;;  %vm273_vm7 = vcmp.ge.f32.partialorder %v223_v20, 0.0 }
 0x122   :  { %v878_v25 = vpop.f32.mrf.mxu0  ;;  %926 = vmatprep.mubr.f32.mxu1 %v302_v23  ;;  %1019 = vmatpush3.msra.mxu1 %v1224_v51 }
 0x123   :  { %v288_v27 = vmul.f32 0.01, %v218_v22  ;;  %v233_v28 = vadd.f32 %v878_v25, %v1265_v60  ;;  %927 = vmatmul.mubr.f32.gmra.mxu1 %v303_v26  ;;  %vm272_vm6 = vcmp.ge.f32.partialorder %v218_v22, 0.0  ;;  %1004 = vmatprep.subr.mxu1 %v1228_v52  ;;  %v305_v34 = vsel %vm273_vm7, %v223_v20, %v289_v24 }
 0x124   :  { %v227_v29 = vpop.f32.mrf.mxu0  ;;  %1020 = vmatpush3.msra.mxu1 %v1228_v52 }
 0x125   :  { %v228_v30 = vadd.f32 %v1265_v60, %v227_v29  ;;  %v304_v31 = vsel %vm272_vm6, %v218_v22, %v288_v27  ;;  %1005 = vmatprep.subr.mxu1 %v1232_v53  ;;  %v291_v32 = vmul.f32 0.01, %v233_v28  ;;  %vm275_vm9 = vcmp.ge.f32.partialorder %v233_v28, 0.0 }
 0x126   :  { %v881_v33 = vpop.f32.mrf.mxu0  ;;  %929 = vmatprep.mubr.f32.mxu1 %v304_v31  ;;  %1021 = vmatpush3.msra.mxu1 %v1232_v53 }
 0x127   :  { %v290_v35 = vmul.f32 0.01, %v228_v30  ;;  %v243_v36 = vadd.f32 %v881_v33, %v1265_v60  ;;  %930 = vmatmul.mubr.f32.gmra.mxu1 %v305_v34  ;;  %vm274_vm8 = vcmp.ge.f32.partialorder %v228_v30, 0.0  ;;  %1006 = vmatprep.subr.mxu1 %v1236_v54  ;;  %v307_v42 = vsel %vm275_vm9, %v233_v28, %v291_v32 }
 0x128   :  { %v237_v37 = vpop.f32.mrf.mxu0  ;;  %1022 = vmatpush3.msra.mxu1 %v1236_v54 }
 0x129   :  { %v238_v38 = vadd.f32 %v1265_v60, %v237_v37  ;;  %v306_v39 = vsel %vm274_vm8, %v228_v30, %v290_v35  ;;  %1007 = vmatprep.subr.mxu1 %v1240_v55  ;;  %v293_v40 = vmul.f32 0.01, %v243_v36  ;;  %vm277_vm11 = vcmp.ge.f32.partialorder %v243_v36, 0.0 }
 0x12a   :  { %v884_v41 = vpop.f32.mrf.mxu0  ;;  %932 = vmatprep.mubr.f32.mxu1 %v306_v39  ;;  %1023 = vmatpush3.msra.mxu1 %v1240_v55 }
 0x12b   :  { %v292_v43 = vmul.f32 0.01, %v238_v38  ;;  %v253_v44 = vadd.f32 %v884_v41, %v1265_v60  ;;  %933 = vmatmul.mubr.f32.gmra.mxu1 %v307_v42  ;;  %vm276_vm10 = vcmp.ge.f32.partialorder %v238_v38, 0.0  ;;  %1008 = vmatprep.subr.mxu1 %v1244_v56  ;;  %v309_v50 = vsel %vm277_vm11, %v243_v36, %v293_v40 }
 0x12c   :  { %v247_v45 = vpop.f32.mrf.mxu0  ;;  %1024 = vmatpush3.msra.mxu1 %v1244_v56 }
 0x12d   :  { %v248_v46 = vadd.f32 %v1265_v60, %v247_v45  ;;  %v308_v47 = vsel %vm276_vm10, %v238_v38, %v292_v43  ;;  %1009 = vmatprep.subr.mxu1 %v1248_v57  ;;  %v295_v48 = vmul.f32 0.01, %v253_v44  ;;  %vm279_vm13 = vcmp.ge.f32.partialorder %v253_v44, 0.0 }
 0x12e   :  { %v887_v49 = vpop.f32.mrf.mxu0  ;;  %935 = vmatprep.mubr.f32.mxu1 %v308_v47  ;;  %1025 = vmatpush3.msra.mxu1 %v1248_v57 }
 0x12f   :  { %v294_v51 = vmul.f32 0.01, %v248_v46  ;;  %v263_v52 = vadd.f32 %v887_v49, %v1265_v60  ;;  %936 = vmatmul.mubr.f32.gmra.mxu1 %v309_v50  ;;  %vm278_vm12 = vcmp.ge.f32.partialorder %v248_v46, 0.0  ;;  %1010 = vmatprep.subr.mxu1 %v1252_v58  ;;  %v311_v61 = vsel %vm279_vm13, %v253_v44, %v295_v48 }
 0x130   :  { %v257_v53 = vpop.f32.mrf.mxu0  ;;  %1026 = vmatpush3.msra.mxu1 %v1252_v58  ;;  %v532_v58 = vld [vmem:[#allocation8 + $0x10] sm:$0xff] }
 0x131   :  { %v258_v54 = vadd.f32 %v1265_v60, %v257_v53  ;;  %v310_v55 = vsel %vm278_vm12, %v248_v46, %v294_v51  ;;  %1011 = vmatprep.subr.mxu1 %v1256_v59  ;;  %v297_v56 = vmul.f32 0.01, %v263_v52  ;;  %vm281_vm15 = vcmp.ge.f32.partialorder %v263_v52, 0.0  ;;  %970 = vmatprep.subr.mxu0 %v532_v58  ;;  %v531_v60 = vld [vmem:[#allocation8 + $0x8] sm:$0xff] }
 0x132   :  { %938 = vmatprep.mubr.f32.mxu1 %v310_v55  ;;  %1027 = vmatpush3.msra.mxu1 %v1256_v59  ;;  %v530_v59 = vld [vmem:[#allocation8] sm:$0xff] }
 0x133   :  { %v296_v57 = vmul.f32 0.01, %v258_v54  ;;  %939 = vmatmul.mubr.f32.gmra.mxu1 %v311_v61  ;;  %vm280_vm14 = vcmp.ge.f32.partialorder %v258_v54, 0.0  ;;  %v313_v63 = vsel %vm281_vm15, %v263_v52, %v297_v56  ;;  %1012 = vmatprep.subr.mxu1 %v533_v0 }
 0x134   :  { %1028 = vmatpush3.msra.mxu1 %v533_v0  ;;  %971 = vmatpush3.msra.mxu0 %v532_v58 }
 0x135   :  { %v312_v62 = vsel %vm280_vm14, %v258_v54, %v296_v57  ;;  %1013 = vmatprep.subr.mxu1 %v532_v58  ;;  %972 = vmatprep.subr.mxu0 %v531_v60 }
 0x136   :  { %941 = vmatprep.mubr.f32.mxu1 %v312_v62  ;;  %1029 = vmatpush3.msra.mxu1 %v532_v58 }
 0x137   :  { %942 = vmatmul.mubr.f32.gmra.mxu1 %v313_v63  ;;  %1014 = vmatprep.subr.mxu1 %v531_v60 }
 0x138   :  { %973 = vmatpush3.msra.mxu0 %v531_v60  ;;  %1030 = vmatpush3.msra.mxu1 %v531_v60 }
 0x139   :  { %974 = vmatprep.subr.mxu0 %v530_v59  ;;  %1015 = vmatprep.subr.mxu1 %v530_v59 }
 0x13a   :  { %975 = vmatpush3.msra.mxu0 %v530_v59  ;;  %1031 = vmatpush3.msra.mxu1 %v530_v59 }
 0x1db   :  { %v922_v2 = vpop.f32.mrf.mxu1 }
 0x1dc   :  { %v409_v3 = vadd.f32 %v922_v2, %v1308_v1 }
 0x1dd   :  { %v403_v4 = vpop.f32.mrf.mxu1 }
 0x1de   :  { %v404_v5 = vadd.f32 %v1308_v1, %v403_v4  ;;  %v499_v6 = vmul.f32 0.01, %v409_v3  ;;  %vm483_vm0 = vcmp.ge.f32.partialorder %v409_v3, 0.0 }
 0x1df   :  { %v925_v7 = vpop.f32.mrf.mxu1 }
 0x1e0   :  { %v498_v8 = vmul.f32 0.01, %v404_v5  ;;  %v419_v9 = vadd.f32 %v925_v7, %v1308_v1  ;;  %vm482_vm1 = vcmp.ge.f32.partialorder %v404_v5, 0.0  ;;  %v515_v13 = vsel %vm483_vm0, %v409_v3, %v499_v6  ;;  %v735_v3 = vld [vmem:[%s1341_s6] ss:$0 sm:$0xff]  ;;  %s1153_s6 = smov [#allocation10]  }
 0x1e1   :  { %v413_v10 = vpop.f32.mrf.mxu1  ;;  %s719_s23 = sshll.u32 %s1153_s6, 4  ;;  %s720_s23 = int_to_ptr.vmem [resolvable:$true] %s719_s23 }
 0x1e2   :  { %v414_v11 = vadd.f32 %v1308_v1, %v413_v10  ;;  %v514_v12 = vsel %vm482_vm1, %v404_v5, %v498_v8  ;;  %v501_v14 = vmul.f32 0.01, %v419_v9  ;;  %vm485_vm3 = vcmp.ge.f32.partialorder %v419_v9, 0.0  ;;  %s1119_s24 = scalar_lea.vmem %s720_s23, 2048  ;;  %p1124_p7 = scmp.lt.s32.totalorder %s720_s23, %s720_s23 }
 0x1e3   :  { %v928_v15 = vpop.f32.mrf.mxu1  ;;  %976 = vmatprep.mubr.f32.mxu0 %v514_v12  ;;  %p1120_p6 = scmp.ne.s32.totalorder %s720_s23, %s1119_s24  ;;  %p1125_p8 = scmp.lt.s32.totalorder %s1119_s24, %s1119_s24 }
 0x1e4   :  { %v500_v16 = vmul.f32 0.01, %v414_v11  ;;  %v429_v17 = vadd.f32 %v928_v15, %v1308_v1  ;;  %977 = vmatmul.mubr.f32.vlgmr.msra.gmra.mxu0 %v515_v13  ;;  %vm484_vm2 = vcmp.ge.f32.partialorder %v414_v11, 0.0  ;;  %v517_v23 = vsel %vm485_vm3, %v419_v9, %v501_v14 }
 0x1e5   :  { %v423_v18 = vpop.f32.mrf.mxu1  ;;  %p1126_p9 = por %p1125_p8, %p1124_p7 }
 0x1e6   :  { %v424_v19 = vadd.f32 %v1308_v1, %v423_v18  ;;  %v516_v20 = vsel %vm484_vm2, %v414_v11, %v500_v16  ;;  %v503_v21 = vmul.f32 0.01, %v429_v17  ;;  %vm487_vm5 = vcmp.ge.f32.partialorder %v429_v17, 0.0 }
 0x1e7   :  { %v931_v22 = vpop.f32.mrf.mxu1  ;;  %979 = vmatprep.mubr.f32.mxu0 %v516_v20  ;;  %p1127_p10 = pnand %p1126_p9, %p1120_p6 }
 0x1e8   :  { %v502_v24 = vmul.f32 0.01, %v424_v19  ;;  %v439_v25 = vadd.f32 %v931_v22, %v1308_v1  ;;  %980 = vmatmul.mubr.f32.gmra.mxu0 %v517_v23  ;;  %vm486_vm4 = vcmp.ge.f32.partialorder %v424_v19, 0.0  ;;  %v519_v31 = vsel %vm487_vm5, %v429_v17, %v503_v21 }
 0x1e9   :  { %v433_v26 = vpop.f32.mrf.mxu1 }
 0x1ea   :  { %v434_v27 = vadd.f32 %v1308_v1, %v433_v26  ;;  %v518_v28 = vsel %vm486_vm4, %v424_v19, %v502_v24  ;;  %v505_v29 = vmul.f32 0.01, %v439_v25  ;;  %vm489_vm7 = vcmp.ge.f32.partialorder %v439_v25, 0.0 }
 0x1eb   :  { %v934_v30 = vpop.f32.mrf.mxu1  ;;  %982 = vmatprep.mubr.f32.mxu0 %v518_v28 }
 0x1ec   :  { %v504_v32 = vmul.f32 0.01, %v434_v27  ;;  %v449_v33 = vadd.f32 %v934_v30, %v1308_v1  ;;  %983 = vmatmul.mubr.f32.gmra.mxu0 %v519_v31  ;;  %vm488_vm6 = vcmp.ge.f32.partialorder %v434_v27, 0.0  ;;  %v521_v39 = vsel %vm489_vm7, %v439_v25, %v505_v29 }
 0x1ed   :  { %v443_v34 = vpop.f32.mrf.mxu1 }
 0x1ee   :  { %v444_v35 = vadd.f32 %v1308_v1, %v443_v34  ;;  %v520_v36 = vsel %vm488_vm6, %v434_v27, %v504_v32  ;;  %v507_v37 = vmul.f32 0.01, %v449_v33  ;;  %vm491_vm8 = vcmp.ge.f32.partialorder %v449_v33, 0.0 }
 0x1ef   :  { %v937_v38 = vpop.f32.mrf.mxu1  ;;  %985 = vmatprep.mubr.f32.mxu0 %v520_v36 }
 0x1f0   :  { %v506_v40 = vmul.f32 0.01, %v444_v35  ;;  %v459_v41 = vadd.f32 %v937_v38, %v1308_v1  ;;  %986 = vmatmul.mubr.f32.gmra.mxu0 %v521_v39  ;;  %vm490_vm9 = vcmp.ge.f32.partialorder %v444_v35, 0.0  ;;  %v523_v45 = vsel %vm491_vm8, %v449_v33, %v507_v37 }
 0x1f1   :  { %v453_v42 = vpop.f32.mrf.mxu1 }
 0x1f2   :  { %v454_v43 = vadd.f32 %v1308_v1, %v453_v42  ;;  %v522_v44 = vsel %vm490_vm9, %v444_v35, %v506_v40  ;;  %v509_v46 = vmul.f32 0.01, %v459_v41  ;;  %vm493_vm11 = vcmp.ge.f32.partialorder %v459_v41, 0.0 }
 0x1f3   :  { %v940_v47 = vpop.f32.mrf.mxu1  ;;  %988 = vmatprep.mubr.f32.mxu1 %v522_v44 }
 0x1f4   :  { %v508_v48 = vmul.f32 0.01, %v454_v43  ;;  %v469_v49 = vadd.f32 %v940_v47, %v1308_v1  ;;  %989 = vmatmul.mubr.f32.vlgmr.msra.gmra.mxu1 %v523_v45  ;;  %vm492_vm10 = vcmp.ge.f32.partialorder %v454_v43, 0.0  ;;  %v525_v55 = vsel %vm493_vm11, %v459_v41, %v509_v46 }
 0x1f5   :  { %v463_v50 = vpop.f32.mrf.mxu1 }
 0x1f6   :  { %v464_v51 = vadd.f32 %v1308_v1, %v463_v50  ;;  %v524_v52 = vsel %vm492_vm10, %v454_v43, %v508_v48  ;;  %v511_v53 = vmul.f32 0.01, %v469_v49  ;;  %vm495_vm13 = vcmp.ge.f32.partialorder %v469_v49, 0.0 }
 0x1f7   :  { %v943_v54 = vpop.f32.mrf.mxu1  ;;  %991 = vmatprep.mubr.f32.mxu1 %v524_v52 }
 0x1f8   :  { %v510_v56 = vmul.f32 0.01, %v464_v51  ;;  %v479_v61 = vadd.f32 %v943_v54, %v1308_v1  ;;  %992 = vmatmul.mubr.f32.gmra.mxu1 %v525_v55  ;;  %vm494_vm12 = vcmp.ge.f32.partialorder %v464_v51, 0.0  ;;  %v527_v58 = vsel %vm495_vm13, %v469_v49, %v511_v53 }
 0x1f9   :  { %v473_v57 = vpop.f32.mrf.mxu1 }
 0x1fa   :  { %v474_v62 = vadd.f32 %v1308_v1, %v473_v57  ;;  %v526_v63 = vsel %vm494_vm12, %v464_v51, %v510_v56  ;;  %v513_v0 = vmul.f32 0.01, %v479_v61  ;;  %vm497_vm15 = vcmp.ge.f32.partialorder %v479_v61, 0.0 }
 0x1fb   :  { %994 = vmatprep.mubr.f32.mxu1 %v526_v63 }
 0x1fc   :  { %v512_v60 = vmul.f32 0.01, %v474_v62  ;;  %995 = vmatmul.mubr.f32.gmra.mxu1 %v527_v58  ;;  %vm496_vm14 = vcmp.ge.f32.partialorder %v474_v62, 0.0  ;;  %v529_v2 = vsel %vm497_vm15, %v479_v61, %v513_v0 }
 0x1fe   :  { %v528_v59 = vsel %vm496_vm14, %v474_v62, %v512_v60 }
 0x1ff   :  { %997 = vmatprep.mubr.f32.mxu1 %v528_v59 }
 0x200   :  { %998 = vmatmul.mubr.f32.gmra.mxu1 %v529_v2 }
 0x2a4   :  { %v978_v4 = vpop.f32.mrf.mxu0 }
 0x2a5   :  { %v625_v5 = vadd.f32 %v978_v4, %v735_v3 }
 0x2a6   :  { %v619_v6 = vpop.f32.mrf.mxu0 }
 0x2a7   :  { %699 = vst [vmem:[#allocation10 + $0x8] sm:$0xff] %v625_v5  ;;  %v620_v1 = vadd.f32 %v735_v3, %v619_v6 }
 0x2a8   :  { %v981_v7 = vpop.f32.mrf.mxu0 }
 0x2a9   :  { %698 = vst [vmem:[#allocation10] sm:$0xff] %v620_v1  ;;  %v635_v8 = vadd.f32 %v981_v7, %v735_v3 }
 0x2aa   :  { %v629_v9 = vpop.f32.mrf.mxu0 }
 0x2ab   :  { %701 = vst [vmem:[#allocation10 + $0x18] sm:$0xff] %v635_v8  ;;  %v630_v10 = vadd.f32 %v735_v3, %v629_v9 }
 0x2ac   :  { %v984_v11 = vpop.f32.mrf.mxu0 }
 0x2ad   :  { %700 = vst [vmem:[#allocation10 + $0x10] sm:$0xff] %v630_v10  ;;  %v645_v12 = vadd.f32 %v984_v11, %v735_v3 }
 0x2ae   :  { %v639_v13 = vpop.f32.mrf.mxu0 }
 0x2af   :  { %703 = vst [vmem:[#allocation10 + $0x28] sm:$0xff] %v645_v12  ;;  %v640_v14 = vadd.f32 %v735_v3, %v639_v13 }
 0x2b0   :  { %v987_v15 = vpop.f32.mrf.mxu0 }
 0x2b1   :  { %702 = vst [vmem:[#allocation10 + $0x20] sm:$0xff] %v640_v14  ;;  %v655_v16 = vadd.f32 %v987_v15, %v735_v3 }
 0x2b2   :  { %v649_v17 = vpop.f32.mrf.mxu0 }
 0x2b3   :  { %705 = vst [vmem:[#allocation10 + $0x38] sm:$0xff] %v655_v16  ;;  %v650_v18 = vadd.f32 %v735_v3, %v649_v17 }
 0x2b4   :  { %v990_v19 = vpop.f32.mrf.mxu1 }
 0x2b5   :  { %704 = vst [vmem:[#allocation10 + $0x30] sm:$0xff] %v650_v18  ;;  %v665_v20 = vadd.f32 %v990_v19, %v735_v3 }
 0x2b6   :  { %v659_v21 = vpop.f32.mrf.mxu1 }
 0x2b7   :  { %707 = vst [vmem:[#allocation10 + $0x48] sm:$0xff] %v665_v20  ;;  %v660_v22 = vadd.f32 %v735_v3, %v659_v21 }
 0x2b8   :  { %v993_v23 = vpop.f32.mrf.mxu1 }
 0x2b9   :  { %706 = vst [vmem:[#allocation10 + $0x40] sm:$0xff] %v660_v22  ;;  %v675_v24 = vadd.f32 %v993_v23, %v735_v3 }
 0x2ba   :  { %v669_v25 = vpop.f32.mrf.mxu1 }
 0x2bb   :  { %709 = vst [vmem:[#allocation10 + $0x58] sm:$0xff] %v675_v24  ;;  %v670_v26 = vadd.f32 %v735_v3, %v669_v25 }
 0x2bc   :  { %v996_v27 = vpop.f32.mrf.mxu1 }
 0x2bd   :  { %708 = vst [vmem:[#allocation10 + $0x50] sm:$0xff] %v670_v26  ;;  %v685_v28 = vadd.f32 %v996_v27, %v735_v3 }
 0x2be   :  { %v679_v29 = vpop.f32.mrf.mxu1 }
 0x2bf   :  { %711 = vst [vmem:[#allocation10 + $0x68] sm:$0xff] %v685_v28  ;;  %v680_v30 = vadd.f32 %v735_v3, %v679_v29 }
 0x2c0   :  { %v999_v31 = vpop.f32.mrf.mxu1 }
 0x2c1   :  { %710 = vst [vmem:[#allocation10 + $0x60] sm:$0xff] %v680_v30  ;;  %v695_v32 = vadd.f32 %v999_v31, %v735_v3 }
 0x2c2   :  { %v689_v33 = vpop.f32.mrf.mxu1 }
 0x2c3   :  { %713 = vst [vmem:[#allocation10 + $0x78] sm:$0xff] %v695_v32  ;;  %v690_v34 = vadd.f32 %v735_v3, %v689_v33 }
 0x2c5   :  { %712 = vst [vmem:[#allocation10 + $0x70] sm:$0xff] %v690_v34 }
 0x2c6   :  { %1130 = shalt.err (!%p1127_p10)
}
 0x2c7   :  { %725 = dma.vmem_to_hbm [thread:$0]  %s720_s23, 2048, %s1342_s7, [#allocation4], %s1149_s29, %s1149_s29, %s1150_s30  }
 0x2c8   :  { %1145 = dma.done.wait [#allocation4], 2048  }
 0x2c9   :  { %1146 = vsyncadd [#allocation4], 4294965248 }
 0x2ca   :  { %729 = vsyncpa [#allocation3], 1 }
 0x2cb   :  { %730 = vsyncpa [#allocation6], 1 }
 0x2cc   :  { %731 = vsyncpa [#allocation9], 1 }
 0x2cd   :  { %732 = vsyncpa [#allocation4], 1 }

// kernel: tpu_custom_call.1
= control target key start
LH: loop header
LB: loop body
LE: loop exit
PB: predicated region body
PF: predicated region fallthrough
CT: control target
= control target key end

     0   :  { %12 = vsyncpa [#allocation3], 0  ;;  %s1335_s0 = inlined_call_operand.hbm [shape: f32[128,128], index: 0, kind: input, shape index: {}]   ;;  %s1336_s1 = inlined_call_operand.hbm [shape: f32[128,128], index: 1, kind: input, shape index: {}]   ;;  %s1337_s2 = inlined_call_operand.vmem [shape: f32[1,128], index: 2, kind: input, shape index: {}]   ;;  %s1338_s3 = inlined_call_operand.hbm [shape: f32[128,128], index: 3, kind: input, shape index: {}]   ;;  %s1339_s4 = inlined_call_operand.vmem [shape: f32[1,128], index: 4, kind: input, shape index: {}]   ;;  %s1340_s5 = inlined_call_operand.hbm [shape: f32[128,128], index: 5, kind: input, shape index: {}]   ;;  %s1341_s6 = inlined_call_operand.vmem [shape: f32[1,128], index: 6, kind: input, shape index: {}]   ;;  %s1342_s7 = inlined_call_operand.hbm [shape: f32[128,128], index: 7, kind: output, shape index: {}]  }
   0x1   :  { %13 = vsyncpa [#allocation6], 0 }
   0x2   :  { %14 = vsyncpa [#allocation9], 0 }
   0x3   :  { %15 = vsyncpa [#allocation4], 0  ;;  %s1147_s24 = smov [#allocation5]   ;;  %s1148_s26 = smov [#allocation2]  }
   0x4   :  { %s33_s25 = sshll.u32 %s1147_s24, 4  ;;  %s21_s27 = sshll.u32 %s1148_s26, 4  ;;  %s34_s25 = int_to_ptr.vmem [resolvable:$true] %s33_s25  ;;  %s22_s27 = int_to_ptr.vmem [resolvable:$true] %s21_s27 }
   0x5   :  { %s1047_s28 = scalar_lea.vmem %s34_s25, 2048  ;;  %p1052_p1 = scmp.lt.s32.totalorder %s34_s25, %s34_s25 }
   0x6   :  { %p1048_p0 = scmp.ne.s32.totalorder %s34_s25, %s1047_s28  ;;  %p1053_p2 = scmp.lt.s32.totalorder %s1047_s28, %s1047_s28 }
   0x8   :  { %p1054_p3 = por %p1053_p2, %p1052_p1 }
   0xa   :  { %p1055_p4 = pnand %p1054_p3, %p1048_p0 }
   0xc   :  { %1058 = shalt.err (!%p1055_p4)
}
   0xd   :  { %s1149_s29 = smov 128   ;;  %s1150_s30 = smov 8  }
   0xe   :  { %39 = dma.hbm_to_vmem [thread:$0]  %s1336_s1, 2048, %s34_s25, [#allocation6], %s1149_s29, %s1149_s29, %s1150_s30  }
   0xf   :  { %s1067_s10 = scalar_lea.vmem %s22_s27, 2048  ;;  %p1072_p6 = scmp.lt.s32.totalorder %s22_s27, %s22_s27 }
  0x10   :  { %p1068_p5 = scmp.ne.s32.totalorder %s22_s27, %s1067_s10  ;;  %p1073_p7 = scmp.lt.s32.totalorder %s1067_s10, %s1067_s10 }
  0x12   :  { %p1074_p8 = por %p1073_p7, %p1072_p6 }
  0x14   :  { %p1075_p9 = pnand %p1074_p8, %p1068_p5 }
  0x16   :  { %1078 = shalt.err (!%p1075_p9)
}
  0x17   :  { %27 = dma.hbm_to_vmem [thread:$0]  %s1335_s0, 2048, %s22_s27, [#allocation3], %s1149_s29, %s1149_s29, %s1150_s30  }
  0x18   :  { %s1151_s13 = smov [#allocation7]   ;;  %s1152_s15 = smov [#allocation8]  }
  0x19   :  { %s47_s14 = sshll.u32 %s1151_s13, 4  ;;  %s61_s16 = sshll.u32 %s1152_s15, 4  ;;  %s48_s14 = int_to_ptr.vmem [resolvable:$true] %s47_s14  ;;  %s62_s16 = int_to_ptr.vmem [resolvable:$true] %s61_s16 }
  0x1a   :  { %s1087_s1 = scalar_lea.vmem %s48_s14, 2048  ;;  %p1092_p11 = scmp.lt.s32.totalorder %s48_s14, %s48_s14 }
  0x1b   :  { %p1088_p10 = scmp.ne.s32.totalorder %s48_s14, %s1087_s1  ;;  %p1093_p12 = scmp.lt.s32.totalorder %s1087_s1, %s1087_s1 }
  0x1d   :  { %p1094_p13 = por %p1093_p12, %p1092_p11 }
  0x1f   :  { %p1095_p0 = pnand %p1094_p13, %p1088_p10 }
  0x21   :  { %1098 = shalt.err (!%p1095_p0)
}
  0x22   :  { %53 = dma.hbm_to_vmem [thread:$0]  %s1338_s3, 2048, %s48_s14, [#allocation6], %s1149_s29, %s1149_s29, %s1150_s30  }
  0x23   :  { %s1107_s0 = scalar_lea.vmem %s62_s16, 2048  ;;  %p1112_p2 = scmp.lt.s32.totalorder %s62_s16, %s62_s16 }
  0x24   :  { %p1108_p1 = scmp.ne.s32.totalorder %s62_s16, %s1107_s0  ;;  %p1113_p3 = scmp.lt.s32.totalorder %s1107_s0, %s1107_s0 }
  0x26   :  { %p1114_p4 = por %p1113_p3, %p1112_p2 }
  0x28   :  { %p1115_p5 = pnand %p1114_p4, %p1108_p1 }
  0x2a   :  { %1118 = shalt.err (!%p1115_p5)
}
  0x2b   :  { %67 = dma.hbm_to_vmem [thread:$0]  %s1340_s5, 2048, %s62_s16, [#allocation9], %s1149_s29, %s1149_s29, %s1150_s30  }
  0x2c   :  { %1139 = dma.done.wait [#allocation3], 2048  }
  0x2d   :  { %1140 = vsyncadd [#allocation3], 4294965248 }
  0x2e   :  { %1141 = dma.done.wait [#allocation6], 4096  }
  0x2f   :  { %1142 = vsyncadd [#allocation6], 4294963200 }
  0x30   :  { %1143 = dma.done.wait [#allocation9], 2048  }
  0x31   :  { %1144 = vsyncadd [#allocation9], 4294965248  ;;  %v113_v0 = vld [vmem:[#allocation5 + $0x78] sm:$0xff]  ;;  %v112_v1 = vld [vmem:[#allocation5 + $0x70] sm:$0xff] }
  0x32   :  { %832 = vmatprep.subr.mxu0 %v113_v0  ;;  %v111_v2 = vld [vmem:[#allocation5 + $0x68] sm:$0xff]  ;;  %v110_v3 = vld [vmem:[#allocation5 + $0x60] sm:$0xff]  ;;  %v109_v5 = vld [vmem:[#allocation5 + $0x58] sm:$0xff] }
  0x33   :  { %833 = vmatpush3.msra.mxu0 %v113_v0  ;;  %v82_v4 = vld [vmem:[#allocation2] sm:$0xff]  ;;  %v108_v6 = vld [vmem:[#allocation5 + $0x50] sm:$0xff]  ;;  %v107_v7 = vld [vmem:[#allocation5 + $0x48] sm:$0xff] }
  0x34   :  { %834 = vmatprep.subr.mxu0 %v112_v1  ;;  %864 = vmatprep.mubr.f32.mxu0 %v82_v4  ;;  %v329_v8 = vld [vmem:[#allocation7 + $0x78] sm:$0xff]  ;;  %v328_v9 = vld [vmem:[#allocation7 + $0x70] sm:$0xff]  ;;  %v106_v10 = vld [vmem:[#allocation5 + $0x40] sm:$0xff] }
  0x35   :  { %835 = vmatpush3.msra.mxu0 %v112_v1  ;;  %888 = vmatprep.subr.mxu1 %v329_v8  ;;  %v327_v11 = vld [vmem:[#allocation7 + $0x68] sm:$0xff]  ;;  %v105_v12 = vld [vmem:[#allocation5 + $0x38] sm:$0xff]  ;;  %v326_v13 = vld [vmem:[#allocation7 + $0x60] sm:$0xff] }
  0x36   :  { %836 = vmatprep.subr.mxu0 %v111_v2  ;;  %889 = vmatpush3.msra.mxu1 %v329_v8  ;;  %v104_v14 = vld [vmem:[#allocation5 + $0x30] sm:$0xff]  ;;  %v325_v15 = vld [vmem:[#allocation7 + $0x58] sm:$0xff]  ;;  %v103_v16 = vld [vmem:[#allocation5 + $0x28] sm:$0xff] }
  0x37   :  { %837 = vmatpush3.msra.mxu0 %v111_v2  ;;  %890 = vmatprep.subr.mxu1 %v328_v9  ;;  %v324_v17 = vld [vmem:[#allocation7 + $0x50] sm:$0xff]  ;;  %v102_v18 = vld [vmem:[#allocation5 + $0x20] sm:$0xff]  ;;  %v323_v19 = vld [vmem:[#allocation7 + $0x48] sm:$0xff] }
  0x38   :  { %838 = vmatprep.subr.mxu0 %v110_v3  ;;  %891 = vmatpush3.msra.mxu1 %v328_v9  ;;  %v101_v20 = vld [vmem:[#allocation5 + $0x18] sm:$0xff]  ;;  %v322_v21 = vld [vmem:[#allocation7 + $0x40] sm:$0xff]  ;;  %v100_v22 = vld [vmem:[#allocation5 + $0x10] sm:$0xff] }
  0x39   :  { %839 = vmatpush3.msra.mxu0 %v110_v3  ;;  %892 = vmatprep.subr.mxu1 %v327_v11  ;;  %v321_v23 = vld [vmem:[#allocation7 + $0x38] sm:$0xff]  ;;  %v99_v24 = vld [vmem:[#allocation5 + $0x8] sm:$0xff]  ;;  %v320_v25 = vld [vmem:[#allocation7 + $0x30] sm:$0xff] }
  0x3a   :  { %840 = vmatprep.subr.mxu0 %v109_v5  ;;  %893 = vmatpush3.msra.mxu1 %v327_v11  ;;  %v98_v26 = vld [vmem:[#allocation5] sm:$0xff]  ;;  %v319_v27 = vld [vmem:[#allocation7 + $0x28] sm:$0xff]  ;;  %v84_v30 = vld [vmem:[#allocation2 + $0x10] sm:$0xff] }
  0x3b   :  { %841 = vmatpush3.msra.mxu0 %v109_v5  ;;  %894 = vmatprep.subr.mxu1 %v326_v13  ;;  %v83_v28 = vld [vmem:[#allocation2 + $0x8] sm:$0xff]  ;;  %v318_v29 = vld [vmem:[#allocation7 + $0x20] sm:$0xff]  ;;  %v85_v31 = vld [vmem:[#allocation2 + $0x18] sm:$0xff] }
  0x3c   :  { %842 = vmatprep.subr.mxu0 %v108_v6  ;;  %895 = vmatpush3.msra.mxu1 %v326_v13  ;;  %v86_v32 = vld [vmem:[#allocation2 + $0x20] sm:$0xff]  ;;  %v87_v33 = vld [vmem:[#allocation2 + $0x28] sm:$0xff]  ;;  %v88_v34 = vld [vmem:[#allocation2 + $0x30] sm:$0xff] }
  0x3d   :  { %843 = vmatpush3.msra.mxu0 %v108_v6  ;;  %896 = vmatprep.subr.mxu1 %v325_v15  ;;  %v89_v35 = vld [vmem:[#allocation2 + $0x38] sm:$0xff]  ;;  %v90_v36 = vld [vmem:[#allocation2 + $0x40] sm:$0xff]  ;;  %v91_v37 = vld [vmem:[#allocation2 + $0x48] sm:$0xff] }
  0x3e   :  { %844 = vmatprep.subr.mxu0 %v107_v7  ;;  %897 = vmatpush3.msra.mxu1 %v325_v15  ;;  %v92_v38 = vld [vmem:[#allocation2 + $0x50] sm:$0xff]  ;;  %v93_v39 = vld [vmem:[#allocation2 + $0x58] sm:$0xff]  ;;  %v94_v40 = vld [vmem:[#allocation2 + $0x60] sm:$0xff] }
  0x3f   :  { %845 = vmatpush3.msra.mxu0 %v107_v7  ;;  %898 = vmatprep.subr.mxu1 %v324_v17  ;;  %v95_v41 = vld [vmem:[#allocation2 + $0x68] sm:$0xff]  ;;  %v96_v42 = vld [vmem:[#allocation2 + $0x70] sm:$0xff]  ;;  %v97_v43 = vld [vmem:[#allocation2 + $0x78] sm:$0xff] }
  0x40   :  { %846 = vmatprep.subr.mxu0 %v106_v10  ;;  %899 = vmatpush3.msra.mxu1 %v324_v17  ;;  %v317_v44 = vld [vmem:[#allocation7 + $0x18] sm:$0xff]  ;;  %v316_v45 = vld [vmem:[#allocation7 + $0x10] sm:$0xff]  ;;  %v315_v46 = vld [vmem:[#allocation7 + $0x8] sm:$0xff] }
  0x41   :  { %847 = vmatpush3.msra.mxu0 %v106_v10  ;;  %900 = vmatprep.subr.mxu1 %v323_v19  ;;  %v314_v47 = vld [vmem:[#allocation7] sm:$0xff]  ;;  %v545_v48 = vld [vmem:[#allocation8 + $0x78] sm:$0xff]  ;;  %v1218_v49 = vld [vmem:[#allocation8 + $0x70] sm:$0xff] }
  0x42   :  { %848 = vmatprep.subr.mxu0 %v105_v12  ;;  %901 = vmatpush3.msra.mxu1 %v323_v19  ;;  %v1220_v50 = vld [vmem:[#allocation8 + $0x68] sm:$0xff]  ;;  %v1224_v51 = vld [vmem:[#allocation8 + $0x60] sm:$0xff]  ;;  %v1228_v52 = vld [vmem:[#allocation8 + $0x58] sm:$0xff] }
  0x43   :  { %849 = vmatpush3.msra.mxu0 %v105_v12  ;;  %902 = vmatprep.subr.mxu1 %v322_v21  ;;  %v1232_v53 = vld [vmem:[#allocation8 + $0x50] sm:$0xff]  ;;  %v1236_v54 = vld [vmem:[#allocation8 + $0x48] sm:$0xff]  ;;  %v1240_v55 = vld [vmem:[#allocation8 + $0x40] sm:$0xff] }
  0x44   :  { %850 = vmatprep.subr.mxu0 %v104_v14  ;;  %903 = vmatpush3.msra.mxu1 %v322_v21  ;;  %v1244_v56 = vld [vmem:[#allocation8 + $0x38] sm:$0xff]  ;;  %v1248_v57 = vld [vmem:[#allocation8 + $0x30] sm:$0xff]  ;;  %v1252_v58 = vld [vmem:[#allocation8 + $0x28] sm:$0xff] }
  0x45   :  { %851 = vmatpush3.msra.mxu0 %v104_v14  ;;  %904 = vmatprep.subr.mxu1 %v321_v23  ;;  %v1256_v59 = vld [vmem:[#allocation8 + $0x20] sm:$0xff] }
  0x46   :  { %852 = vmatprep.subr.mxu0 %v103_v16  ;;  %905 = vmatpush3.msra.mxu1 %v321_v23  ;;  %v1265_v60 = vld [vmem:[%s1337_s2] ss:$0 sm:$0xff] }
  0x47   :  { %853 = vmatpush3.msra.mxu0 %v103_v16  ;;  %906 = vmatprep.subr.mxu1 %v320_v25 }
  0x48   :  { %854 = vmatprep.subr.mxu0 %v102_v18  ;;  %907 = vmatpush3.msra.mxu1 %v320_v25 }
  0x49   :  { %855 = vmatpush3.msra.mxu0 %v102_v18  ;;  %908 = vmatprep.subr.mxu1 %v319_v27 }
  0x4a   :  { %856 = vmatprep.subr.mxu0 %v101_v20  ;;  %909 = vmatpush3.msra.mxu1 %v319_v27 }
  0x4b   :  { %857 = vmatpush3.msra.mxu0 %v101_v20  ;;  %910 = vmatprep.subr.mxu1 %v318_v29 }
  0x4c   :  { %858 = vmatprep.subr.mxu0 %v100_v22  ;;  %911 = vmatpush3.msra.mxu1 %v318_v29 }
  0x4d   :  { %859 = vmatpush3.msra.mxu0 %v100_v22  ;;  %912 = vmatprep.subr.mxu1 %v317_v44 }
  0x4e   :  { %860 = vmatprep.subr.mxu0 %v99_v24  ;;  %913 = vmatpush3.msra.mxu1 %v317_v44 }
  0x4f   :  { %861 = vmatpush3.msra.mxu0 %v99_v24  ;;  %914 = vmatprep.subr.mxu1 %v316_v45 }
  0x50   :  { %862 = vmatprep.subr.mxu0 %v98_v26  ;;  %915 = vmatpush3.msra.mxu1 %v316_v45 }
  0x51   :  { %863 = vmatpush3.msra.mxu0 %v98_v26  ;;  %916 = vmatprep.subr.mxu1 %v315_v46 }
  0x52   :  { %865 = vmatmul.mubr.f32.vlgmr.msra.gmra.mxu0 %v83_v28  ;;  %917 = vmatpush3.msra.mxu1 %v315_v46 }
  0x53   :  { %867 = vmatprep.mubr.f32.mxu0 %v84_v30  ;;  %918 = vmatprep.subr.mxu1 %v314_v47 }
  0x54   :  { %919 = vmatpush3.msra.mxu1 %v314_v47  ;;  %944 = vmatprep.subr.mxu0 %v545_v48 }
  0x55   :  { %1000 = vmatprep.subr.mxu1 %v545_v48  ;;  %945 = vmatpush3.msra.mxu0 %v545_v48 }
  0x56   :  { %868 = vmatmul.mubr.f32.gmra.mxu0 %v85_v31  ;;  %946 = vmatprep.subr.mxu0 %v1218_v49 }
  0x57   :  { %870 = vmatprep.mubr.f32.mxu0 %v86_v32  ;;  %947 = vmatpush3.msra.mxu0 %v1218_v49 }
  0x58   :  { %948 = vmatprep.subr.mxu0 %v1220_v50 }
  0x59   :  { %949 = vmatpush3.msra.mxu0 %v1220_v50 }
  0x5a   :  { %871 = vmatmul.mubr.f32.gmra.mxu0 %v87_v33  ;;  %950 = vmatprep.subr.mxu0 %v1224_v51 }
  0x5b   :  { %873 = vmatprep.mubr.f32.mxu0 %v88_v34  ;;  %951 = vmatpush3.msra.mxu0 %v1224_v51 }
  0x5c   :  { %952 = vmatprep.subr.mxu0 %v1228_v52 }
  0x5d   :  { %953 = vmatpush3.msra.mxu0 %v1228_v52 }
  0x5e   :  { %874 = vmatmul.mubr.f32.gmra.mxu0 %v89_v35  ;;  %954 = vmatprep.subr.mxu0 %v1232_v53 }
  0x5f   :  { %876 = vmatprep.mubr.f32.mxu0 %v90_v36  ;;  %955 = vmatpush3.msra.mxu0 %v1232_v53 }
  0x60   :  { %956 = vmatprep.subr.mxu0 %v1236_v54 }
  0x61   :  { %957 = vmatpush3.msra.mxu0 %v1236_v54 }
  0x62   :  { %877 = vmatmul.mubr.f32.gmra.mxu0 %v91_v37  ;;  %958 = vmatprep.subr.mxu0 %v1240_v55 }
  0x63   :  { %879 = vmatprep.mubr.f32.mxu0 %v92_v38  ;;  %959 = vmatpush3.msra.mxu0 %v1240_v55 }
  0x64   :  { %960 = vmatprep.subr.mxu0 %v1244_v56 }
  0x65   :  { %961 = vmatpush3.msra.mxu0 %v1244_v56 }
  0x66   :  { %880 = vmatmul.mubr.f32.gmra.mxu0 %v93_v39  ;;  %962 = vmatprep.subr.mxu0 %v1248_v57 }
  0x67   :  { %882 = vmatprep.mubr.f32.mxu0 %v94_v40  ;;  %963 = vmatpush3.msra.mxu0 %v1248_v57 }
  0x68   :  { %964 = vmatprep.subr.mxu0 %v1252_v58 }
  0x69   :  { %965 = vmatpush3.msra.mxu0 %v1252_v58 }
  0x6a   :  { %883 = vmatmul.mubr.f32.gmra.mxu0 %v95_v41  ;;  %966 = vmatprep.subr.mxu0 %v1256_v59 }
  0x6b   :  { %885 = vmatprep.mubr.f32.mxu0 %v96_v42  ;;  %967 = vmatpush3.msra.mxu0 %v1256_v59 }
  0x6e   :  { %886 = vmatmul.mubr.f32.gmra.mxu0 %v97_v43 }
 0x112   :  { %v866_v61 = vpop.f32.mrf.mxu0 }
 0x113   :  { %v193_v62 = vadd.f32 %v866_v61, %v1265_v60 }
 0x114   :  { %v187_v63 = vpop.f32.mrf.mxu0 }
 0x115   :  { %v188_v0 = vadd.f32 %v1265_v60, %v187_v63  ;;  %v283_v1 = vmul.f32 0.01, %v193_v62  ;;  %vm267_vm1 = vcmp.ge.f32.partialorder %v193_v62, 0.0 }
 0x116   :  { %v869_v2 = vpop.f32.mrf.mxu0 }
 0x117   :  { %v203_v3 = vadd.f32 %v869_v2, %v1265_v60  ;;  %vm266_vm0 = vcmp.ge.f32.partialorder %v188_v0, 0.0  ;;  %v282_v4 = vmul.f32 0.01, %v188_v0  ;;  %v299_v10 = vsel %vm267_vm1, %v193_v62, %v283_v1  ;;  %v1308_v1 = vld [vmem:[%s1339_s4] ss:$0 sm:$0xff] }
 0x118   :  { %v197_v5 = vpop.f32.mrf.mxu0 }
 0x119   :  { %v198_v6 = vadd.f32 %v1265_v60, %v197_v5  ;;  %v298_v7 = vsel %vm266_vm0, %v188_v0, %v282_v4  ;;  %v285_v8 = vmul.f32 0.01, %v203_v3  ;;  %vm269_vm3 = vcmp.ge.f32.partialorder %v203_v3, 0.0  ;;  %v533_v0 = vld [vmem:[#allocation8 + $0x18] sm:$0xff] }
 0x11a   :  { %v872_v9 = vpop.f32.mrf.mxu0  ;;  %920 = vmatprep.mubr.f32.mxu1 %v298_v7  ;;  %968 = vmatprep.subr.mxu0 %v533_v0 }
 0x11b   :  { %v284_v11 = vmul.f32 0.01, %v198_v6  ;;  %v213_v12 = vadd.f32 %v872_v9, %v1265_v60  ;;  %921 = vmatmul.mubr.f32.vlgmr.msra.gmra.mxu1 %v299_v10  ;;  %vm268_vm2 = vcmp.ge.f32.partialorder %v198_v6, 0.0  ;;  %v301_v18 = vsel %vm269_vm3, %v203_v3, %v285_v8  ;;  %969 = vmatpush3.msra.mxu0 %v533_v0 }
 0x11c   :  { %v207_v13 = vpop.f32.mrf.mxu0  ;;  %1016 = vmatpush3.msra.mxu1 %v545_v48 }
 0x11d   :  { %v208_v14 = vadd.f32 %v1265_v60, %v207_v13  ;;  %v300_v15 = vsel %vm268_vm2, %v198_v6, %v284_v11  ;;  %1001 = vmatprep.subr.mxu1 %v1218_v49  ;;  %v287_v16 = vmul.f32 0.01, %v213_v12  ;;  %vm271_vm5 = vcmp.ge.f32.partialorder %v213_v12, 0.0 }
 0x11e   :  { %v875_v17 = vpop.f32.mrf.mxu0  ;;  %923 = vmatprep.mubr.f32.mxu1 %v300_v15  ;;  %1017 = vmatpush3.msra.mxu1 %v1218_v49 }
 0x11f   :  { %v286_v19 = vmul.f32 0.01, %v208_v14  ;;  %v223_v20 = vadd.f32 %v875_v17, %v1265_v60  ;;  %924 = vmatmul.mubr.f32.gmra.mxu1 %v301_v18  ;;  %vm270_vm4 = vcmp.ge.f32.partialorder %v208_v14, 0.0  ;;  %1002 = vmatprep.subr.mxu1 %v1220_v50  ;;  %v303_v26 = vsel %vm271_vm5, %v213_v12, %v287_v16 }
 0x120   :  { %v217_v21 = vpop.f32.mrf.mxu0  ;;  %1018 = vmatpush3.msra.mxu1 %v1220_v50 }
 0x121   :  { %v218_v22 = vadd.f32 %v1265_v60, %v217_v21  ;;  %v302_v23 = vsel %vm270_vm4, %v208_v14, %v286_v19  ;;  %1003 = vmatprep.subr.mxu1 %v1224_v51  ;;  %v289_v24 = vmul.f32 0.01, %v223_v20  ;;  %vm273_vm7 = vcmp.ge.f32.partialorder %v223_v20, 0.0 }
 0x122   :  { %v878_v25 = vpop.f32.mrf.mxu0  ;;  %926 = vmatprep.mubr.f32.mxu1 %v302_v23  ;;  %1019 = vmatpush3.msra.mxu1 %v1224_v51 }
 0x123   :  { %v288_v27 = vmul.f32 0.01, %v218_v22  ;;  %v233_v28 = vadd.f32 %v878_v25, %v1265_v60  ;;  %927 = vmatmul.mubr.f32.gmra.mxu1 %v303_v26  ;;  %vm272_vm6 = vcmp.ge.f32.partialorder %v218_v22, 0.0  ;;  %1004 = vmatprep.subr.mxu1 %v1228_v52  ;;  %v305_v34 = vsel %vm273_vm7, %v223_v20, %v289_v24 }
 0x124   :  { %v227_v29 = vpop.f32.mrf.mxu0  ;;  %1020 = vmatpush3.msra.mxu1 %v1228_v52 }
 0x125   :  { %v228_v30 = vadd.f32 %v1265_v60, %v227_v29  ;;  %v304_v31 = vsel %vm272_vm6, %v218_v22, %v288_v27  ;;  %1005 = vmatprep.subr.mxu1 %v1232_v53  ;;  %v291_v32 = vmul.f32 0.01, %v233_v28  ;;  %vm275_vm9 = vcmp.ge.f32.partialorder %v233_v28, 0.0 }
 0x126   :  { %v881_v33 = vpop.f32.mrf.mxu0  ;;  %929 = vmatprep.mubr.f32.mxu1 %v304_v31  ;;  %1021 = vmatpush3.msra.mxu1 %v1232_v53 }
 0x127   :  { %v290_v35 = vmul.f32 0.01, %v228_v30  ;;  %v243_v36 = vadd.f32 %v881_v33, %v1265_v60  ;;  %930 = vmatmul.mubr.f32.gmra.mxu1 %v305_v34  ;;  %vm274_vm8 = vcmp.ge.f32.partialorder %v228_v30, 0.0  ;;  %1006 = vmatprep.subr.mxu1 %v1236_v54  ;;  %v307_v42 = vsel %vm275_vm9, %v233_v28, %v291_v32 }
 0x128   :  { %v237_v37 = vpop.f32.mrf.mxu0  ;;  %1022 = vmatpush3.msra.mxu1 %v1236_v54 }
 0x129   :  { %v238_v38 = vadd.f32 %v1265_v60, %v237_v37  ;;  %v306_v39 = vsel %vm274_vm8, %v228_v30, %v290_v35  ;;  %1007 = vmatprep.subr.mxu1 %v1240_v55  ;;  %v293_v40 = vmul.f32 0.01, %v243_v36  ;;  %vm277_vm11 = vcmp.ge.f32.partialorder %v243_v36, 0.0 }
 0x12a   :  { %v884_v41 = vpop.f32.mrf.mxu0  ;;  %932 = vmatprep.mubr.f32.mxu1 %v306_v39  ;;  %1023 = vmatpush3.msra.mxu1 %v1240_v55 }
 0x12b   :  { %v292_v43 = vmul.f32 0.01, %v238_v38  ;;  %v253_v44 = vadd.f32 %v884_v41, %v1265_v60  ;;  %933 = vmatmul.mubr.f32.gmra.mxu1 %v307_v42  ;;  %vm276_vm10 = vcmp.ge.f32.partialorder %v238_v38, 0.0  ;;  %1008 = vmatprep.subr.mxu1 %v1244_v56  ;;  %v309_v50 = vsel %vm277_vm11, %v243_v36, %v293_v40 }
 0x12c   :  { %v247_v45 = vpop.f32.mrf.mxu0  ;;  %1024 = vmatpush3.msra.mxu1 %v1244_v56 }
 0x12d   :  { %v248_v46 = vadd.f32 %v1265_v60, %v247_v45  ;;  %v308_v47 = vsel %vm276_vm10, %v238_v38, %v292_v43  ;;  %1009 = vmatprep.subr.mxu1 %v1248_v57  ;;  %v295_v48 = vmul.f32 0.01, %v253_v44  ;;  %vm279_vm13 = vcmp.ge.f32.partialorder %v253_v44, 0.0 }
 0x12e   :  { %v887_v49 = vpop.f32.mrf.mxu0  ;;  %935 = vmatprep.mubr.f32.mxu1 %v308_v47  ;;  %1025 = vmatpush3.msra.mxu1 %v1248_v57 }
 0x12f   :  { %v294_v51 = vmul.f32 0.01, %v248_v46  ;;  %v263_v52 = vadd.f32 %v887_v49, %v1265_v60  ;;  %936 = vmatmul.mubr.f32.gmra.mxu1 %v309_v50  ;;  %vm278_vm12 = vcmp.ge.f32.partialorder %v248_v46, 0.0  ;;  %1010 = vmatprep.subr.mxu1 %v1252_v58  ;;  %v311_v61 = vsel %vm279_vm13, %v253_v44, %v295_v48 }
 0x130   :  { %v257_v53 = vpop.f32.mrf.mxu0  ;;  %1026 = vmatpush3.msra.mxu1 %v1252_v58  ;;  %v532_v58 = vld [vmem:[#allocation8 + $0x10] sm:$0xff] }
 0x131   :  { %v258_v54 = vadd.f32 %v1265_v60, %v257_v53  ;;  %v310_v55 = vsel %vm278_vm12, %v248_v46, %v294_v51  ;;  %1011 = vmatprep.subr.mxu1 %v1256_v59  ;;  %v297_v56 = vmul.f32 0.01, %v263_v52  ;;  %vm281_vm15 = vcmp.ge.f32.partialorder %v263_v52, 0.0  ;;  %970 = vmatprep.subr.mxu0 %v532_v58  ;;  %v531_v60 = vld [vmem:[#allocation8 + $0x8] sm:$0xff] }
 0x132   :  { %938 = vmatprep.mubr.f32.mxu1 %v310_v55  ;;  %1027 = vmatpush3.msra.mxu1 %v1256_v59  ;;  %v530_v59 = vld [vmem:[#allocation8] sm:$0xff] }
 0x133   :  { %v296_v57 = vmul.f32 0.01, %v258_v54  ;;  %939 = vmatmul.mubr.f32.gmra.mxu1 %v311_v61  ;;  %vm280_vm14 = vcmp.ge.f32.partialorder %v258_v54, 0.0  ;;  %v313_v63 = vsel %vm281_vm15, %v263_v52, %v297_v56  ;;  %1012 = vmatprep.subr.mxu1 %v533_v0 }
 0x134   :  { %1028 = vmatpush3.msra.mxu1 %v533_v0  ;;  %971 = vmatpush3.msra.mxu0 %v532_v58 }
 0x135   :  { %v312_v62 = vsel %vm280_vm14, %v258_v54, %v296_v57  ;;  %1013 = vmatprep.subr.mxu1 %v532_v58  ;;  %972 = vmatprep.subr.mxu0 %v531_v60 }
 0x136   :  { %941 = vmatprep.mubr.f32.mxu1 %v312_v62  ;;  %1029 = vmatpush3.msra.mxu1 %v532_v58 }
 0x137   :  { %942 = vmatmul.mubr.f32.gmra.mxu1 %v313_v63  ;;  %1014 = vmatprep.subr.mxu1 %v531_v60 }
 0x138   :  { %973 = vmatpush3.msra.mxu0 %v531_v60  ;;  %1030 = vmatpush3.msra.mxu1 %v531_v60 }
 0x139   :  { %974 = vmatprep.subr.mxu0 %v530_v59  ;;  %1015 = vmatprep.subr.mxu1 %v530_v59 }
 0x13a   :  { %975 = vmatpush3.msra.mxu0 %v530_v59  ;;  %1031 = vmatpush3.msra.mxu1 %v530_v59 }
 0x1db   :  { %v922_v2 = vpop.f32.mrf.mxu1 }
 0x1dc   :  { %v409_v3 = vadd.f32 %v922_v2, %v1308_v1 }
 0x1dd   :  { %v403_v4 = vpop.f32.mrf.mxu1 }
 0x1de   :  { %v404_v5 = vadd.f32 %v1308_v1, %v403_v4  ;;  %v499_v6 = vmul.f32 0.01, %v409_v3  ;;  %vm483_vm0 = vcmp.ge.f32.partialorder %v409_v3, 0.0 }
 0x1df   :  { %v925_v7 = vpop.f32.mrf.mxu1 }
 0x1e0   :  { %v498_v8 = vmul.f32 0.01, %v404_v5  ;;  %v419_v9 = vadd.f32 %v925_v7, %v1308_v1  ;;  %vm482_vm1 = vcmp.ge.f32.partialorder %v404_v5, 0.0  ;;  %v515_v13 = vsel %vm483_vm0, %v409_v3, %v499_v6  ;;  %v735_v3 = vld [vmem:[%s1341_s6] ss:$0 sm:$0xff]  ;;  %s1153_s6 = smov [#allocation10]  }
 0x1e1   :  { %v413_v10 = vpop.f32.mrf.mxu1  ;;  %s719_s23 = sshll.u32 %s1153_s6, 4  ;;  %s720_s23 = int_to_ptr.vmem [resolvable:$true] %s719_s23 }
 0x1e2   :  { %v414_v11 = vadd.f32 %v1308_v1, %v413_v10  ;;  %v514_v12 = vsel %vm482_vm1, %v404_v5, %v498_v8  ;;  %v501_v14 = vmul.f32 0.01, %v419_v9  ;;  %vm485_vm3 = vcmp.ge.f32.partialorder %v419_v9, 0.0  ;;  %s1119_s24 = scalar_lea.vmem %s720_s23, 2048  ;;  %p1124_p7 = scmp.lt.s32.totalorder %s720_s23, %s720_s23 }
 0x1e3   :  { %v928_v15 = vpop.f32.mrf.mxu1  ;;  %976 = vmatprep.mubr.f32.mxu0 %v514_v12  ;;  %p1120_p6 = scmp.ne.s32.totalorder %s720_s23, %s1119_s24  ;;  %p1125_p8 = scmp.lt.s32.totalorder %s1119_s24, %s1119_s24 }
 0x1e4   :  { %v500_v16 = vmul.f32 0.01, %v414_v11  ;;  %v429_v17 = vadd.f32 %v928_v15, %v1308_v1  ;;  %977 = vmatmul.mubr.f32.vlgmr.msra.gmra.mxu0 %v515_v13  ;;  %vm484_vm2 = vcmp.ge.f32.partialorder %v414_v11, 0.0  ;;  %v517_v23 = vsel %vm485_vm3, %v419_v9, %v501_v14 }
 0x1e5   :  { %v423_v18 = vpop.f32.mrf.mxu1  ;;  %p1126_p9 = por %p1125_p8, %p1124_p7 }
 0x1e6   :  { %v424_v19 = vadd.f32 %v1308_v1, %v423_v18  ;;  %v516_v20 = vsel %vm484_vm2, %v414_v11, %v500_v16  ;;  %v503_v21 = vmul.f32 0.01, %v429_v17  ;;  %vm487_vm5 = vcmp.ge.f32.partialorder %v429_v17, 0.0 }
 0x1e7   :  { %v931_v22 = vpop.f32.mrf.mxu1  ;;  %979 = vmatprep.mubr.f32.mxu0 %v516_v20  ;;  %p1127_p10 = pnand %p1126_p9, %p1120_p6 }
 0x1e8   :  { %v502_v24 = vmul.f32 0.01, %v424_v19  ;;  %v439_v25 = vadd.f32 %v931_v22, %v1308_v1  ;;  %980 = vmatmul.mubr.f32.gmra.mxu0 %v517_v23  ;;  %vm486_vm4 = vcmp.ge.f32.partialorder %v424_v19, 0.0  ;;  %v519_v31 = vsel %vm487_vm5, %v429_v17, %v503_v21 }
 0x1e9   :  { %v433_v26 = vpop.f32.mrf.mxu1 }
 0x1ea   :  { %v434_v27 = vadd.f32 %v1308_v1, %v433_v26  ;;  %v518_v28 = vsel %vm486_vm4, %v424_v19, %v502_v24  ;;  %v505_v29 = vmul.f32 0.01, %v439_v25  ;;  %vm489_vm7 = vcmp.ge.f32.partialorder %v439_v25, 0.0 }
 0x1eb   :  { %v934_v30 = vpop.f32.mrf.mxu1  ;;  %982 = vmatprep.mubr.f32.mxu0 %v518_v28 }
 0x1ec   :  { %v504_v32 = vmul.f32 0.01, %v434_v27  ;;  %v449_v33 = vadd.f32 %v934_v30, %v1308_v1  ;;  %983 = vmatmul.mubr.f32.gmra.mxu0 %v519_v31  ;;  %vm488_vm6 = vcmp.ge.f32.partialorder %v434_v27, 0.0  ;;  %v521_v39 = vsel %vm489_vm7, %v439_v25, %v505_v29 }
 0x1ed   :  { %v443_v34 = vpop.f32.mrf.mxu1 }
 0x1ee   :  { %v444_v35 = vadd.f32 %v1308_v1, %v443_v34  ;;  %v520_v36 = vsel %vm488_vm6, %v434_v27, %v504_v32  ;;  %v507_v37 = vmul.f32 0.01, %v449_v33  ;;  %vm491_vm8 = vcmp.ge.f32.partialorder %v449_v33, 0.0 }
 0x1ef   :  { %v937_v38 = vpop.f32.mrf.mxu1  ;;  %985 = vmatprep.mubr.f32.mxu0 %v520_v36 }
 0x1f0   :  { %v506_v40 = vmul.f32 0.01, %v444_v35  ;;  %v459_v41 = vadd.f32 %v937_v38, %v1308_v1  ;;  %986 = vmatmul.mubr.f32.gmra.mxu0 %v521_v39  ;;  %vm490_vm9 = vcmp.ge.f32.partialorder %v444_v35, 0.0  ;;  %v523_v45 = vsel %vm491_vm8, %v449_v33, %v507_v37 }
 0x1f1   :  { %v453_v42 = vpop.f32.mrf.mxu1 }
 0x1f2   :  { %v454_v43 = vadd.f32 %v1308_v1, %v453_v42  ;;  %v522_v44 = vsel %vm490_vm9, %v444_v35, %v506_v40  ;;  %v509_v46 = vmul.f32 0.01, %v459_v41  ;;  %vm493_vm11 = vcmp.ge.f32.partialorder %v459_v41, 0.0 }
 0x1f3   :  { %v940_v47 = vpop.f32.mrf.mxu1  ;;  %988 = vmatprep.mubr.f32.mxu1 %v522_v44 }
 0x1f4   :  { %v508_v48 = vmul.f32 0.01, %v454_v43  ;;  %v469_v49 = vadd.f32 %v940_v47, %v1308_v1  ;;  %989 = vmatmul.mubr.f32.vlgmr.msra.gmra.mxu1 %v523_v45  ;;  %vm492_vm10 = vcmp.ge.f32.partialorder %v454_v43, 0.0  ;;  %v525_v55 = vsel %vm493_vm11, %v459_v41, %v509_v46 }
 0x1f5   :  { %v463_v50 = vpop.f32.mrf.mxu1 }
 0x1f6   :  { %v464_v51 = vadd.f32 %v1308_v1, %v463_v50  ;;  %v524_v52 = vsel %vm492_vm10, %v454_v43, %v508_v48  ;;  %v511_v53 = vmul.f32 0.01, %v469_v49  ;;  %vm495_vm13 = vcmp.ge.f32.partialorder %v469_v49, 0.0 }
 0x1f7   :  { %v943_v54 = vpop.f32.mrf.mxu1  ;;  %991 = vmatprep.mubr.f32.mxu1 %v524_v52 }
 0x1f8   :  { %v510_v56 = vmul.f32 0.01, %v464_v51  ;;  %v479_v61 = vadd.f32 %v943_v54, %v1308_v1  ;;  %992 = vmatmul.mubr.f32.gmra.mxu1 %v525_v55  ;;  %vm494_vm12 = vcmp.ge.f32.partialorder %v464_v51, 0.0  ;;  %v527_v58 = vsel %vm495_vm13, %v469_v49, %v511_v53 }
 0x1f9   :  { %v473_v57 = vpop.f32.mrf.mxu1 }
 0x1fa   :  { %v474_v62 = vadd.f32 %v1308_v1, %v473_v57  ;;  %v526_v63 = vsel %vm494_vm12, %v464_v51, %v510_v56  ;;  %v513_v0 = vmul.f32 0.01, %v479_v61  ;;  %vm497_vm15 = vcmp.ge.f32.partialorder %v479_v61, 0.0 }
 0x1fb   :  { %994 = vmatprep.mubr.f32.mxu1 %v526_v63 }
 0x1fc   :  { %v512_v60 = vmul.f32 0.01, %v474_v62  ;;  %995 = vmatmul.mubr.f32.gmra.mxu1 %v527_v58  ;;  %vm496_vm14 = vcmp.ge.f32.partialorder %v474_v62, 0.0  ;;  %v529_v2 = vsel %vm497_vm15, %v479_v61, %v513_v0 }
 0x1fe   :  { %v528_v59 = vsel %vm496_vm14, %v474_v62, %v512_v60 }
 0x1ff   :  { %997 = vmatprep.mubr.f32.mxu1 %v528_v59 }
 0x200   :  { %998 = vmatmul.mubr.f32.gmra.mxu1 %v529_v2 }
 0x2a4   :  { %v978_v4 = vpop.f32.mrf.mxu0 }
 0x2a5   :  { %v625_v5 = vadd.f32 %v978_v4, %v735_v3 }
 0x2a6   :  { %v619_v6 = vpop.f32.mrf.mxu0 }
 0x2a7   :  { %699 = vst [vmem:[#allocation10 + $0x8] sm:$0xff] %v625_v5  ;;  %v620_v1 = vadd.f32 %v735_v3, %v619_v6 }
 0x2a8   :  { %v981_v7 = vpop.f32.mrf.mxu0 }
 0x2a9   :  { %698 = vst [vmem:[#allocation10] sm:$0xff] %v620_v1  ;;  %v635_v8 = vadd.f32 %v981_v7, %v735_v3 }
 0x2aa   :  { %v629_v9 = vpop.f32.mrf.mxu0 }
 0x2ab   :  { %701 = vst [vmem:[#allocation10 + $0x18] sm:$0xff] %v635_v8  ;;  %v630_v10 = vadd.f32 %v735_v3, %v629_v9 }
 0x2ac   :  { %v984_v11 = vpop.f32.mrf.mxu0 }
 0x2ad   :  { %700 = vst [vmem:[#allocation10 + $0x10] sm:$0xff] %v630_v10  ;;  %v645_v12 = vadd.f32 %v984_v11, %v735_v3 }
 0x2ae   :  { %v639_v13 = vpop.f32.mrf.mxu0 }
 0x2af   :  { %703 = vst [vmem:[#allocation10 + $0x28] sm:$0xff] %v645_v12  ;;  %v640_v14 = vadd.f32 %v735_v3, %v639_v13 }
 0x2b0   :  { %v987_v15 = vpop.f32.mrf.mxu0 }
 0x2b1   :  { %702 = vst [vmem:[#allocation10 + $0x20] sm:$0xff] %v640_v14  ;;  %v655_v16 = vadd.f32 %v987_v15, %v735_v3 }
 0x2b2   :  { %v649_v17 = vpop.f32.mrf.mxu0 }
 0x2b3   :  { %705 = vst [vmem:[#allocation10 + $0x38] sm:$0xff] %v655_v16  ;;  %v650_v18 = vadd.f32 %v735_v3, %v649_v17 }
 0x2b4   :  { %v990_v19 = vpop.f32.mrf.mxu1 }
 0x2b5   :  { %704 = vst [vmem:[#allocation10 + $0x30] sm:$0xff] %v650_v18  ;;  %v665_v20 = vadd.f32 %v990_v19, %v735_v3 }
 0x2b6   :  { %v659_v21 = vpop.f32.mrf.mxu1 }
 0x2b7   :  { %707 = vst [vmem:[#allocation10 + $0x48] sm:$0xff] %v665_v20  ;;  %v660_v22 = vadd.f32 %v735_v3, %v659_v21 }
 0x2b8   :  { %v993_v23 = vpop.f32.mrf.mxu1 }
 0x2b9   :  { %706 = vst [vmem:[#allocation10 + $0x40] sm:$0xff] %v660_v22  ;;  %v675_v24 = vadd.f32 %v993_v23, %v735_v3 }
 0x2ba   :  { %v669_v25 = vpop.f32.mrf.mxu1 }
 0x2bb   :  { %709 = vst [vmem:[#allocation10 + $0x58] sm:$0xff] %v675_v24  ;;  %v670_v26 = vadd.f32 %v735_v3, %v669_v25 }
 0x2bc   :  { %v996_v27 = vpop.f32.mrf.mxu1 }
 0x2bd   :  { %708 = vst [vmem:[#allocation10 + $0x50] sm:$0xff] %v670_v26  ;;  %v685_v28 = vadd.f32 %v996_v27, %v735_v3 }
 0x2be   :  { %v679_v29 = vpop.f32.mrf.mxu1 }
 0x2bf   :  { %711 = vst [vmem:[#allocation10 + $0x68] sm:$0xff] %v685_v28  ;;  %v680_v30 = vadd.f32 %v735_v3, %v679_v29 }
 0x2c0   :  { %v999_v31 = vpop.f32.mrf.mxu1 }
 0x2c1   :  { %710 = vst [vmem:[#allocation10 + $0x60] sm:$0xff] %v680_v30  ;;  %v695_v32 = vadd.f32 %v999_v31, %v735_v3 }
 0x2c2   :  { %v689_v33 = vpop.f32.mrf.mxu1 }
 0x2c3   :  { %713 = vst [vmem:[#allocation10 + $0x78] sm:$0xff] %v695_v32  ;;  %v690_v34 = vadd.f32 %v735_v3, %v689_v33 }
 0x2c5   :  { %712 = vst [vmem:[#allocation10 + $0x70] sm:$0xff] %v690_v34 }
 0x2c6   :  { %1130 = shalt.err (!%p1127_p10)
}
 0x2c7   :  { %725 = dma.vmem_to_hbm [thread:$0]  %s720_s23, 2048, %s1342_s7, [#allocation4], %s1149_s29, %s1149_s29, %s1150_s30  }
 0x2c8   :  { %1145 = dma.done.wait [#allocation4], 2048  }
 0x2c9   :  { %1146 = vsyncadd [#allocation4], 4294965248 }
 0x2ca   :  { %729 = vsyncpa [#allocation3], 1 }
 0x2cb   :  { %730 = vsyncpa [#allocation6], 1 }
 0x2cc   :  { %731 = vsyncpa [#allocation9], 1 }
 0x2cd   :  { %732 = vsyncpa [#allocation4], 1 }

</bundles_post_ra>
